<compile_context>
chip_gen: v5e
topology: v5e:2x2
jax: 0.10.0
libtpu: 0.0.40
codegen_flags: <defaults>
</compile_context>

<pallas_src>
import jax
import jax.numpy as jnp
import numpy as np
from jax.experimental import pallas as pl
from jax.experimental.pallas import tpu as pltpu

# ------------------------- configuration (static) ---------------------------
IN_CH = 32          # cfg.in_ch
HIDDEN = 64         # cfg.hidden_ch
OUT_CH = 1          # cfg.out_ch
COLOR_IN = 32       # cfg.color_in_ch
FUSE_LAYER = 2      # cfg.fuse_layer (out2_2 is the shape feature)
USE_TANH = True     # cfg.use_tanh
HEADS = OUT_CH + 3  # fused output width (sdf + rgb)

COMPUTE_DTYPE = jnp.bfloat16   # MXU operand dtype (accumulation stays f32)

N_POINTS = 512      # demo number of query points


# ------------------------------ Pallas kernel -------------------------------
def decoder_kernel(*refs):
    zs_ref, zc_ref = refs[0], refs[1]
    (p0, b0, w1, b1, w2, b2, w3, b3,
     w4a, b4, w5, b5, p6, b6, bc1, w7, b7,
     wc1z, wc2, bc2, wc3, bc3, pout, bout) = refs[2:-1]
    out_ref = refs[-1]

    relu = jax.nn.relu

    def mm(w_ref, h):
        w = w_ref[...]                       # weights pre-cast to COMPUTE_DTYPE
        return jnp.dot(w, h.astype(w.dtype), preferred_element_type=jnp.float32)

    x = zs_ref[...]                          # (IN_CH, TM)  f32
    zc = zc_ref[...]                         # (COLOR_IN, TM)

    # --- fused: shape_net.net1[0]  +  (x-half of net2_1's concat weight) ----
    t = mm(p0, x)                            # (2*HIDDEN, TM)
    h = relu(t[:HIDDEN] + b0[...])
    x4 = t[HIDDEN:]                          # W4_x @ x, bias added at layer 4

    # --- rest of shape_net.net1 ---------------------------------------------
    h = relu(mm(w1, h) + b1[...])
    h = relu(mm(w2, h) + b2[...])
    out1 = relu(mm(w3, h) + b3[...])         # (HIDDEN-IN_CH, TM)

    # in2 = cat([out1, x]) -> split-K matmul (out1 half here, x half above)
    out2_1 = relu(mm(w4a, out1) + x4 + b4[...])
    out2_2 = relu(mm(w5, out2_1) + b5[...])

    # --- fused: net2_3 weight + feature-half of color layer 1 (both read out2_2,
    #            fuse_layer == 2) ---------------------------------------------
    t = mm(p6, out2_2)                       # (2*HIDDEN, TM)
    out2_3 = relu(t[:HIDDEN] + b6[...])
    cfeat = t[HIDDEN:]                       # Wc1_feat @ out2_2

    out2_4 = relu(mm(w7, out2_3) + b7[...])

    # --- color net (latent_color = cat([z_color, feat]) via split-K) --------
    hc = relu(mm(wc1z, zc) + cfeat + bc1[...])
    hc = relu(mm(wc2, hc) + bc2[...])
    hc = relu(mm(wc3, hc) + bc3[...])

    # --- fused output heads: block-diag [W_sdf 0; 0 W_rgb] on [out2_4; hc] ---
    stacked = jnp.concatenate([out2_4, hc], axis=0)      # (2*HIDDEN, TM)
    heads = mm(pout, stacked) + bout[...]                # (4, TM)
    if USE_TANH:
        heads = jnp.tanh(heads)

    out_ref[...] = heads.astype(out_ref.dtype)           # single lane-dense store


# --------------------------- weight packing ---------------------------------
def pack_params(params, dtype):
    """params: 13 (W (out,in), b (out,)) f32 pairs in PyTorch layer order."""
    (W0, b0), (W1, b1), (W2, b2), (W3, b3), (W4, b4), (W5, b5), (W6, b6), \
        (W7, b7), (W8, b8), (Wc1, bc1), (Wc2, bc2), (Wc3, bc3), (Wc4, bc4) = params

    def w(a):
        return a.astype(dtype)

    def b(a):
        return a.reshape(-1, 1).astype(jnp.float32)

    out1_ch = HIDDEN - IN_CH
    # layer0 and x-half of layer4 both consume z_shape -> stack output dims
    p0 = w(jnp.concatenate([W0, W4[:, out1_ch:]], axis=0))          # (128, 32)
    w4a = w(W4[:, :out1_ch])                                        # (64, 32)
    # net2_3 and feat-half of color layer 1 both consume out2_2 -> stack
    p6 = w(jnp.concatenate([W6, Wc1[:, COLOR_IN:]], axis=0))        # (128, 64)
    wc1z = w(Wc1[:, :COLOR_IN])                                     # (64, 32)
    # block-diagonal fused output head
    pout = w(jnp.block([
        [W8, jnp.zeros((OUT_CH, HIDDEN), jnp.float32)],
        [jnp.zeros((3, HIDDEN), jnp.float32), Wc4]]))               # (4, 128)
    bout = jnp.concatenate([b(b8), b(bc4)], axis=0)                 # (4, 1)

    return [p0, b(b0), w(W1), b(b1), w(W2), b(b2), w(W3), b(b3),
            w4a, b(b4), w(W5), b(b5), p6, b(b6), b(bc1), w(W7), b(b7),
            wc1z, w(Wc2), b(bc2), w(Wc3), b(bc3), pout, bout]


def _pick_tile(n):
    # Largest 128-aligned tile (<=1024 rows) that still gives >=2 parallel grid
    # steps (keeps both v7x TensorCores busy); single tile for tiny n.
    for tm in (1024, 512, 256, 128):
        if n % tm == 0 and n // tm >= 2:
            return tm
    return n


# ------------------------------- wrapper ------------------------------------
def decoder_forward(z_shape, z_color, params, compute_dtype=COMPUTE_DTYPE):
    n = z_shape.shape[0]
    tm = _pick_tile(n)
    assert n % tm == 0
    grid = (n // tm,)

    # feature-major layout: points on the lane axis (layout plumbing, off-kernel)
    zs_t = z_shape.T                                    # (IN_CH, n)
    zc_t = z_color.T                                    # (COLOR_IN, n)
    packed = pack_params(params, compute_dtype)

    in_specs = [
        pl.BlockSpec((IN_CH, tm), lambda i: (0, i)),
        pl.BlockSpec((COLOR_IN, tm), lambda i: (0, i)),
    ]
    # Weights/biases: constant index map -> not re-DMA'd across grid steps.
    # (They are tiny: ~100 KiB total in bf16, so double-buffer allocation is moot.)
    for arr in packed:
        in_specs.append(pl.BlockSpec(arr.shape, lambda i: (0, 0)))

    out_spec = pl.BlockSpec((HEADS, tm), lambda i: (0, i))
    out_shape = jax.ShapeDtypeStruct((HEADS, n), jnp.float32)

    heads = pl.pallas_call(
        decoder_kernel,
        out_shape=out_shape,
        grid_spec=pltpu.PrefetchScalarGridSpec(
            num_scalar_prefetch=0,
            grid=grid,
            in_specs=in_specs,
            out_specs=out_spec,
        ),
        compiler_params=pltpu.CompilerParams(
            dimension_semantics=("parallel",),
            vmem_limit_bytes=32 * 1024 * 1024,
        ),
    )(zs_t, zc_t, *packed)

    sdf = heads[:OUT_CH, :].T                           # (n, 1)
    col = heads[OUT_CH:, :].T                           # (n, 3)
    return sdf, col


# --------------------------- parameter creation ------------------------------
def make_linear(key, in_dim, out_dim, weight_norm=True):
    kv, kg, kb = jax.random.split(key, 3)
    v = jax.random.normal(kv, (out_dim, in_dim), jnp.float32) * 0.1
    b = jax.random.normal(kb, (out_dim,), jnp.float32) * 0.01
    if weight_norm:
        # nn.utils.weight_norm(dim=0): W = g * V / ||V||_row
        g = jax.random.uniform(kg, (out_dim, 1), jnp.float32, 0.5, 1.5)
        w = g * v / jnp.linalg.norm(v, axis=1, keepdims=True)
    else:
        w = v
    return w, b                                         # (out, in), (out,)


def build_params(key):
    dims = [
        # shape_net.net1 (weight_norm)
        (IN_CH, HIDDEN, True),
        (HIDDEN, HIDDEN, True),
        (HIDDEN, HIDDEN, True),
        (HIDDEN, HIDDEN - IN_CH, True),
        # shape_net.net2_1..4 (weight_norm)
        (HIDDEN, HIDDEN, True),
        (HIDDEN, HIDDEN, True),
        (HIDDEN, HIDDEN, True),
        (HIDDEN, HIDDEN, True),
        # shape_net.out (plain linear)
        (HIDDEN, OUT_CH, False),
        # color_net (3x weight_norm + plain out)
        (COLOR_IN + HIDDEN, HIDDEN, True),
        (HIDDEN, HIDDEN, True),
        (HIDDEN, HIDDEN, True),
        (HIDDEN, 3, False),
    ]
    keys = jax.random.split(key, len(dims))
    return [make_linear(k, i, o, wn) for k, (i, o, wn) in zip(keys, dims)]


# ----------------------------- pure-JAX reference ----------------------------
def ref_forward(z_shape, z_color, params, compute_dtype=COMPUTE_DTYPE):
    def lin(h, i):
        w, b = params[i]
        return (jnp.dot(h.astype(compute_dtype), w.T.astype(compute_dtype),
                        preferred_element_type=jnp.float32) + b)

    relu = jax.nn.relu
    x = z_shape
    h = relu(lin(x, 0))
    h = relu(lin(h, 1))
    h = relu(lin(h, 2))
    out1 = relu(lin(h, 3))
    in2 = jnp.concatenate([out1, x], axis=-1)
    out2_1 = relu(lin(in2, 4))
    out2_2 = relu(lin(out2_1, 5))
    out2_3 = relu(lin(out2_2, 6))
    out2_4 = relu(lin(out2_3, 7))
    sdf = lin(out2_4, 8)
    if USE_TANH:
        sdf = jnp.tanh(sdf)
    feat = out2_2  # fuse_layer == 2
    latent_color = jnp.concatenate([z_color, feat], axis=-1)
    hc = relu(lin(latent_color, 9))
    hc = relu(lin(hc, 10))
    hc = relu(lin(hc, 11))
    col = lin(hc, 12)
    if USE_TANH:
        col = jnp.tanh(col)
    return sdf, col


# ---------------------------------- main --------------------------------------
if __name__ == "__main__":
    key = jax.random.PRNGKey(0)
    k_p, k_zs, k_zc = jax.random.split(key, 3)

    params = build_params(k_p)
    z_shape = jax.random.normal(k_zs, (N_POINTS, IN_CH), jnp.float32)
    z_color = jax.random.normal(k_zc, (N_POINTS, COLOR_IN), jnp.float32)

    fwd = jax.jit(decoder_forward)
    shape_out, color_out = fwd(z_shape, z_color, params)
    jax.block_until_ready((shape_out, color_out))

    # Reference uses identical bf16 matmul operands (f32 accumulation).
    ref_shape, ref_color = ref_forward(z_shape, z_color, params)
    np.testing.assert_allclose(np.asarray(shape_out), np.asarray(ref_shape),
                               rtol=2e-3, atol=2e-3)
    np.testing.assert_allclose(np.asarray(color_out), np.asarray(ref_color),
                               rtol=2e-3, atol=2e-3)

    print("KERNEL_OK")
</pallas_src>

<mosaic_0001>
module attributes {stable_mosaic.version = 11 : i64} {
  func.func @decoder_kernel(%arg0: i32, %arg1: memref<32x256xf32, #tpu.memory_space<vmem>>, %arg2: memref<32x256xf32, #tpu.memory_space<vmem>>, %arg3: memref<128x32xbf16, #tpu.memory_space<vmem>>, %arg4: memref<64x1xf32, #tpu.memory_space<vmem>>, %arg5: memref<64x64xbf16, #tpu.memory_space<vmem>>, %arg6: memref<64x1xf32, #tpu.memory_space<vmem>>, %arg7: memref<64x64xbf16, #tpu.memory_space<vmem>>, %arg8: memref<64x1xf32, #tpu.memory_space<vmem>>, %arg9: memref<32x64xbf16, #tpu.memory_space<vmem>>, %arg10: memref<32x1xf32, #tpu.memory_space<vmem>>, %arg11: memref<64x32xbf16, #tpu.memory_space<vmem>>, %arg12: memref<64x1xf32, #tpu.memory_space<vmem>>, %arg13: memref<64x64xbf16, #tpu.memory_space<vmem>>, %arg14: memref<64x1xf32, #tpu.memory_space<vmem>>, %arg15: memref<128x64xbf16, #tpu.memory_space<vmem>>, %arg16: memref<64x1xf32, #tpu.memory_space<vmem>>, %arg17: memref<64x1xf32, #tpu.memory_space<vmem>>, %arg18: memref<64x64xbf16, #tpu.memory_space<vmem>>, %arg19: memref<64x1xf32, #tpu.memory_space<vmem>>, %arg20: memref<64x32xbf16, #tpu.memory_space<vmem>>, %arg21: memref<64x64xbf16, #tpu.memory_space<vmem>>, %arg22: memref<64x1xf32, #tpu.memory_space<vmem>>, %arg23: memref<64x64xbf16, #tpu.memory_space<vmem>>, %arg24: memref<64x1xf32, #tpu.memory_space<vmem>>, %arg25: memref<4x128xbf16, #tpu.memory_space<vmem>>, %arg26: memref<4x1xf32, #tpu.memory_space<vmem>>, %arg27: memref<4x256xf32, #tpu.memory_space<vmem>>) attributes {dimension_semantics = [#tpu.dimension_semantics<parallel>], iteration_bounds = array<i64: 2>, scalar_prefetch = 0 : i64, scratch_operands = 0 : i64, tpu.core_type = #tpu.core_type<tc>, window_params = [{transform_indices = @transform_0, window_bounds = array<i64: 32, 256>}, {transform_indices = @transform_1, window_bounds = array<i64: 32, 256>}, {pipeline_mode = #tpu.pipeline_mode<synchronous>, transform_indices = @transform_2, window_bounds = array<i64: 128, 32>}, {pipeline_mode = #tpu.pipeline_mode<synchronous>, transform_indices = @transform_3, window_bounds = array<i64: 64, 1>}, {pipeline_mode = #tpu.pipeline_mode<synchronous>, transform_indices = @transform_4, window_bounds = array<i64: 64, 64>}, {pipeline_mode = #tpu.pipeline_mode<synchronous>, transform_indices = @transform_5, window_bounds = array<i64: 64, 1>}, {pipeline_mode = #tpu.pipeline_mode<synchronous>, transform_indices = @transform_6, window_bounds = array<i64: 64, 64>}, {pipeline_mode = #tpu.pipeline_mode<synchronous>, transform_indices = @transform_7, window_bounds = array<i64: 64, 1>}, {pipeline_mode = #tpu.pipeline_mode<synchronous>, transform_indices = @transform_8, window_bounds = array<i64: 32, 64>}, {pipeline_mode = #tpu.pipeline_mode<synchronous>, transform_indices = @transform_9, window_bounds = array<i64: 32, 1>}, {pipeline_mode = #tpu.pipeline_mode<synchronous>, transform_indices = @transform_10, window_bounds = array<i64: 64, 32>}, {pipeline_mode = #tpu.pipeline_mode<synchronous>, transform_indices = @transform_11, window_bounds = array<i64: 64, 1>}, {pipeline_mode = #tpu.pipeline_mode<synchronous>, transform_indices = @transform_12, window_bounds = array<i64: 64, 64>}, {pipeline_mode = #tpu.pipeline_mode<synchronous>, transform_indices = @transform_13, window_bounds = array<i64: 64, 1>}, {pipeline_mode = #tpu.pipeline_mode<synchronous>, transform_indices = @transform_14, window_bounds = array<i64: 128, 64>}, {pipeline_mode = #tpu.pipeline_mode<synchronous>, transform_indices = @transform_15, window_bounds = array<i64: 64, 1>}, {pipeline_mode = #tpu.pipeline_mode<synchronous>, transform_indices = @transform_16, window_bounds = array<i64: 64, 1>}, {pipeline_mode = #tpu.pipeline_mode<synchronous>, transform_indices = @transform_17, window_bounds = array<i64: 64, 64>}, {pipeline_mode = #tpu.pipeline_mode<synchronous>, transform_indices = @transform_18, window_bounds = array<i64: 64, 1>}, {pipeline_mode = #tpu.pipeline_mode<synchronous>, transform_indices = @transform_19, window_bounds = array<i64: 64, 32>}, {pipeline_mode = #tpu.pipeline_mode<synchronous>, transform_indices = @transform_20, window_bounds = array<i64: 64, 64>}, {pipeline_mode = #tpu.pipeline_mode<synchronous>, transform_indices = @transform_21, window_bounds = array<i64: 64, 1>}, {pipeline_mode = #tpu.pipeline_mode<synchronous>, transform_indices = @transform_22, window_bounds = array<i64: 64, 64>}, {pipeline_mode = #tpu.pipeline_mode<synchronous>, transform_indices = @transform_23, window_bounds = array<i64: 64, 1>}, {pipeline_mode = #tpu.pipeline_mode<synchronous>, transform_indices = @transform_24, window_bounds = array<i64: 4, 128>}, {pipeline_mode = #tpu.pipeline_mode<synchronous>, transform_indices = @transform_25, window_bounds = array<i64: 4, 1>}, {transform_indices = @transform_26, window_bounds = array<i64: 4, 256>}]} {
    %c0 = arith.constant 0 : index
    %c0_0 = arith.constant 0 : index
    %0 = vector.load %arg1[%c0, %c0_0] : memref<32x256xf32, #tpu.memory_space<vmem>>, vector<32x256xf32>
    %c0_1 = arith.constant 0 : index
    %c0_2 = arith.constant 0 : index
    %1 = vector.load %arg2[%c0_1, %c0_2] : memref<32x256xf32, #tpu.memory_space<vmem>>, vector<32x256xf32>
    %c0_3 = arith.constant 0 : index
    %c0_4 = arith.constant 0 : index
    %2 = vector.load %arg3[%c0_3, %c0_4] : memref<128x32xbf16, #tpu.memory_space<vmem>>, vector<128x32xbf16>
    %3 = arith.truncf %0 : vector<32x256xf32> to vector<32x256xbf16>
    %cst = arith.constant dense<0.000000e+00> : vector<128x256xf32>
    %4 = tpu.matmul %2, %3, %cst {dimension_numbers = #tpu.dot_dimension_numbers<[1], [0], [0], [1], [0, 0, 1, 1], [], []>} : vector<128x32xbf16>, vector<32x256xbf16>, vector<128x256xf32> -> vector<128x256xf32>
    %5 = vector.extract_strided_slice %4 {offsets = [0, 0], sizes = [64, 256], strides = [1, 1]} : vector<128x256xf32> to vector<64x256xf32>
    %c0_5 = arith.constant 0 : index
    %c0_6 = arith.constant 0 : index
    %6 = vector.load %arg4[%c0_5, %c0_6] : memref<64x1xf32, #tpu.memory_space<vmem>>, vector<64x1xf32>
    %7 = vector.broadcast %6 : vector<64x1xf32> to vector<64x256xf32>
    %8 = arith.addf %5, %7 : vector<64x256xf32>
    %cst_7 = arith.constant 0.000000e+00 : f32
    %9 = vector.broadcast %cst_7 : f32 to vector<64x256xf32>
    %10 = arith.maximumf %8, %9 : vector<64x256xf32>
    %11 = vector.extract_strided_slice %4 {offsets = [64, 0], sizes = [64, 256], strides = [1, 1]} : vector<128x256xf32> to vector<64x256xf32>
    %c0_8 = arith.constant 0 : index
    %c0_9 = arith.constant 0 : index
    %12 = vector.load %arg5[%c0_8, %c0_9] : memref<64x64xbf16, #tpu.memory_space<vmem>>, vector<64x64xbf16>
    %13 = arith.truncf %10 : vector<64x256xf32> to vector<64x256xbf16>
    %cst_10 = arith.constant dense<0.000000e+00> : vector<64x256xf32>
    %14 = tpu.matmul %12, %13, %cst_10 {dimension_numbers = #tpu.dot_dimension_numbers<[1], [0], [0], [1], [0, 0, 1, 1], [], []>} : vector<64x64xbf16>, vector<64x256xbf16>, vector<64x256xf32> -> vector<64x256xf32>
    %c0_11 = arith.constant 0 : index
    %c0_12 = arith.constant 0 : index
    %15 = vector.load %arg6[%c0_11, %c0_12] : memref<64x1xf32, #tpu.memory_space<vmem>>, vector<64x1xf32>
    %16 = vector.broadcast %15 : vector<64x1xf32> to vector<64x256xf32>
    %17 = arith.addf %14, %16 : vector<64x256xf32>
    %cst_13 = arith.constant 0.000000e+00 : f32
    %18 = vector.broadcast %cst_13 : f32 to vector<64x256xf32>
    %19 = arith.maximumf %17, %18 : vector<64x256xf32>
    %c0_14 = arith.constant 0 : index
    %c0_15 = arith.constant 0 : index
    %20 = vector.load %arg7[%c0_14, %c0_15] : memref<64x64xbf16, #tpu.memory_space<vmem>>, vector<64x64xbf16>
    %21 = arith.truncf %19 : vector<64x256xf32> to vector<64x256xbf16>
    %cst_16 = arith.constant dense<0.000000e+00> : vector<64x256xf32>
    %22 = tpu.matmul %20, %21, %cst_16 {dimension_numbers = #tpu.dot_dimension_numbers<[1], [0], [0], [1], [0, 0, 1, 1], [], []>} : vector<64x64xbf16>, vector<64x256xbf16>, vector<64x256xf32> -> vector<64x256xf32>
    %c0_17 = arith.constant 0 : index
    %c0_18 = arith.constant 0 : index
    %23 = vector.load %arg8[%c0_17, %c0_18] : memref<64x1xf32, #tpu.memory_space<vmem>>, vector<64x1xf32>
    %24 = vector.broadcast %23 : vector<64x1xf32> to vector<64x256xf32>
    %25 = arith.addf %22, %24 : vector<64x256xf32>
    %cst_19 = arith.constant 0.000000e+00 : f32
    %26 = vector.broadcast %cst_19 : f32 to vector<64x256xf32>
    %27 = arith.maximumf %25, %26 : vector<64x256xf32>
    %c0_20 = arith.constant 0 : index
    %c0_21 = arith.constant 0 : index
    %28 = vector.load %arg9[%c0_20, %c0_21] : memref<32x64xbf16, #tpu.memory_space<vmem>>, vector<32x64xbf16>
    %29 = arith.truncf %27 : vector<64x256xf32> to vector<64x256xbf16>
    %cst_22 = arith.constant dense<0.000000e+00> : vector<32x256xf32>
    %30 = tpu.matmul %28, %29, %cst_22 {dimension_numbers = #tpu.dot_dimension_numbers<[1], [0], [0], [1], [0, 0, 1, 1], [], []>} : vector<32x64xbf16>, vector<64x256xbf16>, vector<32x256xf32> -> vector<32x256xf32>
    %c0_23 = arith.constant 0 : index
    %c0_24 = arith.constant 0 : index
    %31 = vector.load %arg10[%c0_23, %c0_24] : memref<32x1xf32, #tpu.memory_space<vmem>>, vector<32x1xf32>
    %32 = vector.broadcast %31 : vector<32x1xf32> to vector<32x256xf32>
    %33 = arith.addf %30, %32 : vector<32x256xf32>
    %cst_25 = arith.constant 0.000000e+00 : f32
    %34 = vector.broadcast %cst_25 : f32 to vector<32x256xf32>
    %35 = arith.maximumf %33, %34 : vector<32x256xf32>
    %c0_26 = arith.constant 0 : index
    %c0_27 = arith.constant 0 : index
    %36 = vector.load %arg11[%c0_26, %c0_27] : memref<64x32xbf16, #tpu.memory_space<vmem>>, vector<64x32xbf16>
    %37 = arith.truncf %35 : vector<32x256xf32> to vector<32x256xbf16>
    %cst_28 = arith.constant dense<0.000000e+00> : vector<64x256xf32>
    %38 = tpu.matmul %36, %37, %cst_28 {dimension_numbers = #tpu.dot_dimension_numbers<[1], [0], [0], [1], [0, 0, 1, 1], [], []>} : vector<64x32xbf16>, vector<32x256xbf16>, vector<64x256xf32> -> vector<64x256xf32>
    %39 = arith.addf %38, %11 : vector<64x256xf32>
    %c0_29 = arith.constant 0 : index
    %c0_30 = arith.constant 0 : index
    %40 = vector.load %arg12[%c0_29, %c0_30] : memref<64x1xf32, #tpu.memory_space<vmem>>, vector<64x1xf32>
    %41 = vector.broadcast %40 : vector<64x1xf32> to vector<64x256xf32>
    %42 = arith.addf %39, %41 : vector<64x256xf32>
    %cst_31 = arith.constant 0.000000e+00 : f32
    %43 = vector.broadcast %cst_31 : f32 to vector<64x256xf32>
    %44 = arith.maximumf %42, %43 : vector<64x256xf32>
    %c0_32 = arith.constant 0 : index
    %c0_33 = arith.constant 0 : index
    %45 = vector.load %arg13[%c0_32, %c0_33] : memref<64x64xbf16, #tpu.memory_space<vmem>>, vector<64x64xbf16>
    %46 = arith.truncf %44 : vector<64x256xf32> to vector<64x256xbf16>
    %cst_34 = arith.constant dense<0.000000e+00> : vector<64x256xf32>
    %47 = tpu.matmul %45, %46, %cst_34 {dimension_numbers = #tpu.dot_dimension_numbers<[1], [0], [0], [1], [0, 0, 1, 1], [], []>} : vector<64x64xbf16>, vector<64x256xbf16>, vector<64x256xf32> -> vector<64x256xf32>
    %c0_35 = arith.constant 0 : index
    %c0_36 = arith.constant 0 : index
    %48 = vector.load %arg14[%c0_35, %c0_36] : memref<64x1xf32, #tpu.memory_space<vmem>>, vector<64x1xf32>
    %49 = vector.broadcast %48 : vector<64x1xf32> to vector<64x256xf32>
    %50 = arith.addf %47, %49 : vector<64x256xf32>
    %cst_37 = arith.constant 0.000000e+00 : f32
    %51 = vector.broadcast %cst_37 : f32 to vector<64x256xf32>
    %52 = arith.maximumf %50, %51 : vector<64x256xf32>
    %c0_38 = arith.constant 0 : index
    %c0_39 = arith.constant 0 : index
    %53 = vector.load %arg15[%c0_38, %c0_39] : memref<128x64xbf16, #tpu.memory_space<vmem>>, vector<128x64xbf16>
    %54 = arith.truncf %52 : vector<64x256xf32> to vector<64x256xbf16>
    %cst_40 = arith.constant dense<0.000000e+00> : vector<128x256xf32>
    %55 = tpu.matmul %53, %54, %cst_40 {dimension_numbers = #tpu.dot_dimension_numbers<[1], [0], [0], [1], [0, 0, 1, 1], [], []>} : vector<128x64xbf16>, vector<64x256xbf16>, vector<128x256xf32> -> vector<128x256xf32>
    %56 = vector.extract_strided_slice %55 {offsets = [0, 0], sizes = [64, 256], strides = [1, 1]} : vector<128x256xf32> to vector<64x256xf32>
    %c0_41 = arith.constant 0 : index
    %c0_42 = arith.constant 0 : index
    %57 = vector.load %arg16[%c0_41, %c0_42] : memref<64x1xf32, #tpu.memory_space<vmem>>, vector<64x1xf32>
    %58 = vector.broadcast %57 : vector<64x1xf32> to vector<64x256xf32>
    %59 = arith.addf %56, %58 : vector<64x256xf32>
    %cst_43 = arith.constant 0.000000e+00 : f32
    %60 = vector.broadcast %cst_43 : f32 to vector<64x256xf32>
    %61 = arith.maximumf %59, %60 : vector<64x256xf32>
    %62 = vector.extract_strided_slice %55 {offsets = [64, 0], sizes = [64, 256], strides = [1, 1]} : vector<128x256xf32> to vector<64x256xf32>
    %c0_44 = arith.constant 0 : index
    %c0_45 = arith.constant 0 : index
    %63 = vector.load %arg18[%c0_44, %c0_45] : memref<64x64xbf16, #tpu.memory_space<vmem>>, vector<64x64xbf16>
    %64 = arith.truncf %61 : vector<64x256xf32> to vector<64x256xbf16>
    %cst_46 = arith.constant dense<0.000000e+00> : vector<64x256xf32>
    %65 = tpu.matmul %63, %64, %cst_46 {dimension_numbers = #tpu.dot_dimension_numbers<[1], [0], [0], [1], [0, 0, 1, 1], [], []>} : vector<64x64xbf16>, vector<64x256xbf16>, vector<64x256xf32> -> vector<64x256xf32>
    %c0_47 = arith.constant 0 : index
    %c0_48 = arith.constant 0 : index
    %66 = vector.load %arg19[%c0_47, %c0_48] : memref<64x1xf32, #tpu.memory_space<vmem>>, vector<64x1xf32>
    %67 = vector.broadcast %66 : vector<64x1xf32> to vector<64x256xf32>
    %68 = arith.addf %65, %67 : vector<64x256xf32>
    %cst_49 = arith.constant 0.000000e+00 : f32
    %69 = vector.broadcast %cst_49 : f32 to vector<64x256xf32>
    %70 = arith.maximumf %68, %69 : vector<64x256xf32>
    %c0_50 = arith.constant 0 : index
    %c0_51 = arith.constant 0 : index
    %71 = vector.load %arg20[%c0_50, %c0_51] : memref<64x32xbf16, #tpu.memory_space<vmem>>, vector<64x32xbf16>
    %72 = arith.truncf %1 : vector<32x256xf32> to vector<32x256xbf16>
    %cst_52 = arith.constant dense<0.000000e+00> : vector<64x256xf32>
    %73 = tpu.matmul %71, %72, %cst_52 {dimension_numbers = #tpu.dot_dimension_numbers<[1], [0], [0], [1], [0, 0, 1, 1], [], []>} : vector<64x32xbf16>, vector<32x256xbf16>, vector<64x256xf32> -> vector<64x256xf32>
    %74 = arith.addf %73, %62 : vector<64x256xf32>
    %c0_53 = arith.constant 0 : index
    %c0_54 = arith.constant 0 : index
    %75 = vector.load %arg17[%c0_53, %c0_54] : memref<64x1xf32, #tpu.memory_space<vmem>>, vector<64x1xf32>
    %76 = vector.broadcast %75 : vector<64x1xf32> to vector<64x256xf32>
    %77 = arith.addf %74, %76 : vector<64x256xf32>
    %cst_55 = arith.constant 0.000000e+00 : f32
    %78 = vector.broadcast %cst_55 : f32 to vector<64x256xf32>
    %79 = arith.maximumf %77, %78 : vector<64x256xf32>
    %c0_56 = arith.constant 0 : index
    %c0_57 = arith.constant 0 : index
    %80 = vector.load %arg21[%c0_56, %c0_57] : memref<64x64xbf16, #tpu.memory_space<vmem>>, vector<64x64xbf16>
    %81 = arith.truncf %79 : vector<64x256xf32> to vector<64x256xbf16>
    %cst_58 = arith.constant dense<0.000000e+00> : vector<64x256xf32>
    %82 = tpu.matmul %80, %81, %cst_58 {dimension_numbers = #tpu.dot_dimension_numbers<[1], [0], [0], [1], [0, 0, 1, 1], [], []>} : vector<64x64xbf16>, vector<64x256xbf16>, vector<64x256xf32> -> vector<64x256xf32>
    %c0_59 = arith.constant 0 : index
    %c0_60 = arith.constant 0 : index
    %83 = vector.load %arg22[%c0_59, %c0_60] : memref<64x1xf32, #tpu.memory_space<vmem>>, vector<64x1xf32>
    %84 = vector.broadcast %83 : vector<64x1xf32> to vector<64x256xf32>
    %85 = arith.addf %82, %84 : vector<64x256xf32>
    %cst_61 = arith.constant 0.000000e+00 : f32
    %86 = vector.broadcast %cst_61 : f32 to vector<64x256xf32>
    %87 = arith.maximumf %85, %86 : vector<64x256xf32>
    %c0_62 = arith.constant 0 : index
    %c0_63 = arith.constant 0 : index
    %88 = vector.load %arg23[%c0_62, %c0_63] : memref<64x64xbf16, #tpu.memory_space<vmem>>, vector<64x64xbf16>
    %89 = arith.truncf %87 : vector<64x256xf32> to vector<64x256xbf16>
    %cst_64 = arith.constant dense<0.000000e+00> : vector<64x256xf32>
    %90 = tpu.matmul %88, %89, %cst_64 {dimension_numbers = #tpu.dot_dimension_numbers<[1], [0], [0], [1], [0, 0, 1, 1], [], []>} : vector<64x64xbf16>, vector<64x256xbf16>, vector<64x256xf32> -> vector<64x256xf32>
    %c0_65 = arith.constant 0 : index
    %c0_66 = arith.constant 0 : index
    %91 = vector.load %arg24[%c0_65, %c0_66] : memref<64x1xf32, #tpu.memory_space<vmem>>, vector<64x1xf32>
    %92 = vector.broadcast %91 : vector<64x1xf32> to vector<64x256xf32>
    %93 = arith.addf %90, %92 : vector<64x256xf32>
    %cst_67 = arith.constant 0.000000e+00 : f32
    %94 = vector.broadcast %cst_67 : f32 to vector<64x256xf32>
    %95 = arith.maximumf %93, %94 : vector<64x256xf32>
    %96 = tpu.concatenate %70, %95 in 0 : vector<64x256xf32>, vector<64x256xf32> -> vector<128x256xf32>
    %c0_68 = arith.constant 0 : index
    %c0_69 = arith.constant 0 : index
    %97 = vector.load %arg25[%c0_68, %c0_69] : memref<4x128xbf16, #tpu.memory_space<vmem>>, vector<4x128xbf16>
    %98 = arith.truncf %96 : vector<128x256xf32> to vector<128x256xbf16>
    %cst_70 = arith.constant dense<0.000000e+00> : vector<4x256xf32>
    %99 = tpu.matmul %97, %98, %cst_70 {dimension_numbers = #tpu.dot_dimension_numbers<[1], [0], [0], [1], [0, 0, 1, 1], [], []>} : vector<4x128xbf16>, vector<128x256xbf16>, vector<4x256xf32> -> vector<4x256xf32>
    %c0_71 = arith.constant 0 : index
    %c0_72 = arith.constant 0 : index
    %100 = vector.load %arg26[%c0_71, %c0_72] : memref<4x1xf32, #tpu.memory_space<vmem>>, vector<4x1xf32>
    %101 = vector.broadcast %100 : vector<4x1xf32> to vector<4x256xf32>
    %102 = arith.addf %99, %101 : vector<4x256xf32>
    %103 = math.tanh %102 : vector<4x256xf32>
    %c0_73 = arith.constant 0 : index
    %c0_74 = arith.constant 0 : index
    %104 = vector.load %arg27[%c0_73, %c0_74] : memref<4x256xf32, #tpu.memory_space<vmem>>, vector<4x256xf32>
    tpu.vector_store %arg27[%c0_73, %c0_74], %103 {strides = array<i32>} : memref<4x256xf32, #tpu.memory_space<vmem>>, vector<4x256xf32>,
    return
  }
  func.func @transform_0(%arg0: i32) -> (i32, i32) {
    %c0_i32 = arith.constant 0 : i32
    %c0_i32_0 = arith.constant 0 : i32
    return %c0_i32, %arg0 : i32, i32
  }
  func.func @transform_1(%arg0: i32) -> (i32, i32) {
    %c0_i32 = arith.constant 0 : i32
    %c0_i32_0 = arith.constant 0 : i32
    return %c0_i32, %arg0 : i32, i32
  }
  func.func @transform_2(%arg0: i32) -> (i32, i32) {
    %c0_i32 = arith.constant 0 : i32
    %c0_i32_0 = arith.constant 0 : i32
    %c0_i32_1 = arith.constant 0 : i32
    return %c0_i32, %c0_i32_0 : i32, i32
  }
  func.func @transform_3(%arg0: i32) -> (i32, i32) {
    %c0_i32 = arith.constant 0 : i32
    %c0_i32_0 = arith.constant 0 : i32
    %c0_i32_1 = arith.constant 0 : i32
    return %c0_i32, %c0_i32_0 : i32, i32
  }
  func.func @transform_4(%arg0: i32) -> (i32, i32) {
    %c0_i32 = arith.constant 0 : i32
    %c0_i32_0 = arith.constant 0 : i32
    %c0_i32_1 = arith.constant 0 : i32
    return %c0_i32, %c0_i32_0 : i32, i32
  }
  func.func @transform_5(%arg0: i32) -> (i32, i32) {
    %c0_i32 = arith.constant 0 : i32
    %c0_i32_0 = arith.constant 0 : i32
    %c0_i32_1 = arith.constant 0 : i32
    return %c0_i32, %c0_i32_0 : i32, i32
  }
  func.func @transform_6(%arg0: i32) -> (i32, i32) {
    %c0_i32 = arith.constant 0 : i32
    %c0_i32_0 = arith.constant 0 : i32
    %c0_i32_1 = arith.constant 0 : i32
    return %c0_i32, %c0_i32_0 : i32, i32
  }
  func.func @transform_7(%arg0: i32) -> (i32, i32) {
    %c0_i32 = arith.constant 0 : i32
    %c0_i32_0 = arith.constant 0 : i32
    %c0_i32_1 = arith.constant 0 : i32
    return %c0_i32, %c0_i32_0 : i32, i32
  }
  func.func @transform_8(%arg0: i32) -> (i32, i32) {
    %c0_i32 = arith.constant 0 : i32
    %c0_i32_0 = arith.constant 0 : i32
    %c0_i32_1 = arith.constant 0 : i32
    return %c0_i32, %c0_i32_0 : i32, i32
  }
  func.func @transform_9(%arg0: i32) -> (i32, i32) {
    %c0_i32 = arith.constant 0 : i32
    %c0_i32_0 = arith.constant 0 : i32
    %c0_i32_1 = arith.constant 0 : i32
    return %c0_i32, %c0_i32_0 : i32, i32
  }
  func.func @transform_10(%arg0: i32) -> (i32, i32) {
    %c0_i32 = arith.constant 0 : i32
    %c0_i32_0 = arith.constant 0 : i32
    %c0_i32_1 = arith.constant 0 : i32
    return %c0_i32, %c0_i32_0 : i32, i32
  }
  func.func @transform_11(%arg0: i32) -> (i32, i32) {
    %c0_i32 = arith.constant 0 : i32
    %c0_i32_0 = arith.constant 0 : i32
    %c0_i32_1 = arith.constant 0 : i32
    return %c0_i32, %c0_i32_0 : i32, i32
  }
  func.func @transform_12(%arg0: i32) -> (i32, i32) {
    %c0_i32 = arith.constant 0 : i32
    %c0_i32_0 = arith.constant 0 : i32
    %c0_i32_1 = arith.constant 0 : i32
    return %c0_i32, %c0_i32_0 : i32, i32
  }
  func.func @transform_13(%arg0: i32) -> (i32, i32) {
    %c0_i32 = arith.constant 0 : i32
    %c0_i32_0 = arith.constant 0 : i32
    %c0_i32_1 = arith.constant 0 : i32
    return %c0_i32, %c0_i32_0 : i32, i32
  }
  func.func @transform_14(%arg0: i32) -> (i32, i32) {
    %c0_i32 = arith.constant 0 : i32
    %c0_i32_0 = arith.constant 0 : i32
    %c0_i32_1 = arith.constant 0 : i32
    return %c0_i32, %c0_i32_0 : i32, i32
  }
  func.func @transform_15(%arg0: i32) -> (i32, i32) {
    %c0_i32 = arith.constant 0 : i32
    %c0_i32_0 = arith.constant 0 : i32
    %c0_i32_1 = arith.constant 0 : i32
    return %c0_i32, %c0_i32_0 : i32, i32
  }
  func.func @transform_16(%arg0: i32) -> (i32, i32) {
    %c0_i32 = arith.constant 0 : i32
    %c0_i32_0 = arith.constant 0 : i32
    %c0_i32_1 = arith.constant 0 : i32
    return %c0_i32, %c0_i32_0 : i32, i32
  }
  func.func @transform_17(%arg0: i32) -> (i32, i32) {
    %c0_i32 = arith.constant 0 : i32
    %c0_i32_0 = arith.constant 0 : i32
    %c0_i32_1 = arith.constant 0 : i32
    return %c0_i32, %c0_i32_0 : i32, i32
  }
  func.func @transform_18(%arg0: i32) -> (i32, i32) {
    %c0_i32 = arith.constant 0 : i32
    %c0_i32_0 = arith.constant 0 : i32
    %c0_i32_1 = arith.constant 0 : i32
    return %c0_i32, %c0_i32_0 : i32, i32
  }
  func.func @transform_19(%arg0: i32) -> (i32, i32) {
    %c0_i32 = arith.constant 0 : i32
    %c0_i32_0 = arith.constant 0 : i32
    %c0_i32_1 = arith.constant 0 : i32
    return %c0_i32, %c0_i32_0 : i32, i32
  }
  func.func @transform_20(%arg0: i32) -> (i32, i32) {
    %c0_i32 = arith.constant 0 : i32
    %c0_i32_0 = arith.constant 0 : i32
    %c0_i32_1 = arith.constant 0 : i32
    return %c0_i32, %c0_i32_0 : i32, i32
  }
  func.func @transform_21(%arg0: i32) -> (i32, i32) {
    %c0_i32 = arith.constant 0 : i32
    %c0_i32_0 = arith.constant 0 : i32
    %c0_i32_1 = arith.constant 0 : i32
    return %c0_i32, %c0_i32_0 : i32, i32
  }
  func.func @transform_22(%arg0: i32) -> (i32, i32) {
    %c0_i32 = arith.constant 0 : i32
    %c0_i32_0 = arith.constant 0 : i32
    %c0_i32_1 = arith.constant 0 : i32
    return %c0_i32, %c0_i32_0 : i32, i32
  }
  func.func @transform_23(%arg0: i32) -> (i32, i32) {
    %c0_i32 = arith.constant 0 : i32
    %c0_i32_0 = arith.constant 0 : i32
    %c0_i32_1 = arith.constant 0 : i32
    return %c0_i32, %c0_i32_0 : i32, i32
  }
  func.func @transform_24(%arg0: i32) -> (i32, i32) {
    %c0_i32 = arith.constant 0 : i32
    %c0_i32_0 = arith.constant 0 : i32
    %c0_i32_1 = arith.constant 0 : i32
    return %c0_i32, %c0_i32_0 : i32, i32
  }
  func.func @transform_25(%arg0: i32) -> (i32, i32) {
    %c0_i32 = arith.constant 0 : i32
    %c0_i32_0 = arith.constant 0 : i32
    %c0_i32_1 = arith.constant 0 : i32
    return %c0_i32, %c0_i32_0 : i32, i32
  }
  func.func @transform_26(%arg0: i32) -> (i32, i32) {
    %c0_i32 = arith.constant 0 : i32
    %c0_i32_0 = arith.constant 0 : i32
    return %c0_i32, %arg0 : i32, i32
  }
}

</mosaic_0001>

<bundles_post_ra>
// kernel: decoder_forward.1
= control target key start
LH: loop header
LB: loop body
LE: loop exit
PB: predicated region body
PF: predicated region fallthrough
CT: control target
= control target key end

     0   :  { %s4384_s0 = inlined_call_operand.vmem [shape: f32[32,512], index: 0, kind: input, shape index: {}]   ;;  %s4385_s1 = inlined_call_operand.vmem [shape: f32[32,512], index: 1, kind: input, shape index: {}]   ;;  %s4386_s2 = inlined_call_operand.vmem [shape: bf16[128,32], index: 2, kind: input, shape index: {}]   ;;  %s4387_s3 = inlined_call_operand.vmem [shape: f32[64,1], index: 3, kind: input, shape index: {}]   ;;  %s4388_s4 = inlined_call_operand.vmem [shape: bf16[64,64], index: 4, kind: input, shape index: {}]   ;;  %s4389_s5 = inlined_call_operand.vmem [shape: f32[64,1], index: 5, kind: input, shape index: {}]   ;;  %s4390_s6 = inlined_call_operand.vmem [shape: bf16[64,64], index: 6, kind: input, shape index: {}]   ;;  %s4391_s7 = inlined_call_operand.vmem [shape: f32[64,1], index: 7, kind: input, shape index: {}]   ;;  %s4392_s8 = inlined_call_operand.vmem [shape: bf16[32,64], index: 8, kind: input, shape index: {}]   ;;  %s4393_s9 = inlined_call_operand.vmem [shape: f32[32,1], index: 9, kind: input, shape index: {}]   ;;  %s4394_s10 = inlined_call_operand.vmem [shape: bf16[64,32], index: 10, kind: input, shape index: {}]   ;;  %s4395_s11 = inlined_call_operand.vmem [shape: f32[64,1], index: 11, kind: input, shape index: {}]   ;;  %s4396_s12 = inlined_call_operand.vmem [shape: bf16[64,64], index: 12, kind: input, shape index: {}]   ;;  %s4397_s13 = inlined_call_operand.vmem [shape: f32[64,1], index: 13, kind: input, shape index: {}]   ;;  %s4398_s14 = inlined_call_operand.vmem [shape: bf16[128,64], index: 14, kind: input, shape index: {}]   ;;  %s4399_s15 = inlined_call_operand.vmem [shape: f32[64,1], index: 15, kind: input, shape index: {}]   ;;  %s4400_s16 = inlined_call_operand.vmem [shape: f32[64,1], index: 16, kind: input, shape index: {}]   ;;  %s4401_s17 = inlined_call_operand.vmem [shape: bf16[64,64], index: 17, kind: input, shape index: {}]   ;;  %s4402_s18 = inlined_call_operand.vmem [shape: f32[64,1], index: 18, kind: input, shape index: {}]   ;;  %s4403_s19 = inlined_call_operand.vmem [shape: bf16[64,32], index: 19, kind: input, shape index: {}]   ;;  %s4404_s20 = inlined_call_operand.vmem [shape: bf16[64,64], index: 20, kind: input, shape index: {}]   ;;  %s4405_s21 = inlined_call_operand.vmem [shape: f32[64,1], index: 21, kind: input, shape index: {}]   ;;  %s4406_s22 = inlined_call_operand.vmem [shape: bf16[64,64], index: 22, kind: input, shape index: {}]   ;;  %s4407_s23 = inlined_call_operand.vmem [shape: f32[64,1], index: 23, kind: input, shape index: {}]   ;;  %s4408_s24 = inlined_call_operand.vmem [shape: bf16[4,128], index: 24, kind: input, shape index: {}]   ;;  %s4409_s25 = inlined_call_operand.vmem [shape: f32[4,1], index: 25, kind: input, shape index: {}]   ;;  %s4410_s26 = inlined_call_operand.vmem [shape: f32[4,512], index: 26, kind: output, shape index: {}]  }
   0x1   :  { %4427 = sst [smem:[#allocation17_spill]] %s4384_s0 }
   0x2   :  { %4428 = sst [smem:[#allocation18_spill]] %s4385_s1 }
   0x3   :  { %4429 = sst [smem:[#allocation19_spill]] %s4386_s2 }
   0x4   :  { %4430 = sst [smem:[#allocation20_spill]] %s4387_s3 }
   0x5   :  { %4431 = sst [smem:[#allocation21_spill]] %s4388_s4 }
   0x6   :  { %4432 = sst [smem:[#allocation22_spill]] %s4389_s5 }
   0x7   :  { %4433 = sst [smem:[#allocation23_spill]] %s4390_s6 }
   0x8   :  { %4434 = sst [smem:[#allocation24_spill]] %s4391_s7 }
   0x9   :  { %4435 = sst [smem:[#allocation25_spill]] %s4392_s8 }
   0xa   :  { %4436 = sst [smem:[#allocation26_spill]] %s4393_s9 }
   0xb   :  { %4437 = sst [smem:[#allocation27_spill]] %s4394_s10 }
   0xc   :  { %s3611_s27 = smov 0   ;;  %s3613_s3 = smov 0  }
   0xd   :  { %s3615_s7 = smov 0  }
   0xe LB: > { %4438 = sst [smem:[#allocation4_spill]] %s3469_s3  ;;  %s3628_s8 = sadd.s32 1, %s3473_s7   ;;  %s3473_s7 = sphi %s3615_s7, %s4474_s7   ;;  %s3469_s3 = sphi %s3613_s3, %s4476_s3   ;;  %s3465_s27 = sphi %s3611_s27, %s4475_s27  }
   0xf   : > { %4439 = sst [smem:[#allocation5_spill]] %s3628_s8  ;;  %s40_s4 = ssub.s32 %s3473_s7, %s3628_s8 }
  0x10   : > { %s43_s29 = sadd.s32 1, %s3469_s3  ;;  %p41_p0 = scmp.eq.s32.totalorder %s40_s4, 0 }
  0x11   : > { %p50_p1 = scmp.ne.s32.totalorder %s3469_s3, %s3465_s27  ;;  %p51_p2 = scmp.eq.s32.totalorder %s3473_s7, 0 }
  0x12   : > { %s3637_s0 = scalar_select %p41_p0, %s3469_s3, %s43_s29  }
  0x13   : > { %p3639_p3 = por %p51_p2, %p50_p1  ;;  %p3053_p4 = scmp.ge.s32.totalorder %s3473_s7, 2 }
  0x14   : > { %4440 = sst [smem:[#allocation6_spill]] %s3637_s0 }
  0x15   : > { %704 = sbr.rel (%p3053_p4) target bundleno = 62 (0x3e), region = 112 }
  0x1a   : > { %707 = sbr.rel (!%p3639_p3) target bundleno = 44 (0x2c), region = 116  ;;  %s709_s30 = sand.u32 (%p3639_p3), 1, %s3469_s3  }
  0x1b   : > { %s3367_s2 = sshll.u32 (%p3639_p3), %s3473_s7, 4  ;;  %s3054_s5 = sshll.u32 (%p3639_p3), %s709_s30, 6 }
  0x1c   : > { %s4442_s1 = sld [smem:[#allocation17_spill]] (%p3639_p3)  ;;  %s711_s29 = scalar_lea.vmem (%p3639_p3), [#allocation2], %s3054_s5 }
  0x22   : > { %s714_s4 = scalar_lea.vmem %s4442_s1, %s3367_s2 }
  0x23   : > { %v727_v0 = vld [vmem:[%s714_s4] sm:$0xff]  ;;  %v729_v1 = vld [vmem:[%s714_s4 + $0x8] sm:$0xff] }
  0x24   : > { %v731_v2 = vld [vmem:[%s714_s4 + $0x20] sm:$0xff]  ;;  %728 = vst [vmem:[%s711_s29] sm:$0xff] %v727_v0  ;;  %v733_v3 = vld [vmem:[%s714_s4 + $0x28] sm:$0xff] }
  0x25   : > { %730 = vst [vmem:[%s711_s29 + $0x8] sm:$0xff] %v729_v1  ;;  %v735_v4 = vld [vmem:[%s714_s4 + $0x40] sm:$0xff]  ;;  %v737_v5 = vld [vmem:[%s714_s4 + $0x48] sm:$0xff] }
  0x26   : > { %732 = vst [vmem:[%s711_s29 + $0x10] sm:$0xff] %v731_v2  ;;  %v739_v6 = vld [vmem:[%s714_s4 + $0x60] sm:$0xff]  ;;  %v741_v7 = vld [vmem:[%s714_s4 + $0x68] sm:$0xff] }
  0x27   : > { %734 = vst [vmem:[%s711_s29 + $0x18] sm:$0xff] %v733_v3 }
  0x28   : > { %736 = vst [vmem:[%s711_s29 + $0x20] sm:$0xff] %v735_v4 }
  0x29   : > { %738 = vst [vmem:[%s711_s29 + $0x28] sm:$0xff] %v737_v5 }
  0x2a   : > { %740 = vst [vmem:[%s711_s29 + $0x30] sm:$0xff] %v739_v6 }
  0x2b   : > { %742 = vst [vmem:[%s711_s29 + $0x38] sm:$0xff] %v741_v7 }
  0x2c PF: > { %748 = sbr.rel (!%p3639_p3) target bundleno = 62 (0x3e), region = 139  ;;  %s750_s30 = sand.u32 (%p3639_p3), 1, %s3469_s3  }
  0x2d   : > { %s3368_s2 = sshll.u32 (%p3639_p3), %s3473_s7, 4  ;;  %s3057_s5 = sshll.u32 (%p3639_p3), %s750_s30, 6 }
  0x2e   : > { %s4443_s1 = sld [smem:[#allocation18_spill]] (%p3639_p3)  ;;  %s752_s4 = scalar_lea.vmem (%p3639_p3), [#allocation3], %s3057_s5 }
  0x34   : > { %s755_s28 = scalar_lea.vmem %s4443_s1, %s3368_s2 }
  0x35   : > { %v768_v8 = vld [vmem:[%s755_s28] sm:$0xff]  ;;  %v770_v9 = vld [vmem:[%s755_s28 + $0x8] sm:$0xff] }
  0x36   : > { %v772_v10 = vld [vmem:[%s755_s28 + $0x20] sm:$0xff]  ;;  %769 = vst [vmem:[%s752_s4] sm:$0xff] %v768_v8  ;;  %v774_v11 = vld [vmem:[%s755_s28 + $0x28] sm:$0xff] }
  0x37   : > { %771 = vst [vmem:[%s752_s4 + $0x8] sm:$0xff] %v770_v9  ;;  %v776_v12 = vld [vmem:[%s755_s28 + $0x40] sm:$0xff]  ;;  %v778_v13 = vld [vmem:[%s755_s28 + $0x48] sm:$0xff] }
  0x38   : > { %773 = vst [vmem:[%s752_s4 + $0x10] sm:$0xff] %v772_v10  ;;  %v780_v14 = vld [vmem:[%s755_s28 + $0x60] sm:$0xff]  ;;  %v782_v15 = vld [vmem:[%s755_s28 + $0x68] sm:$0xff] }
  0x39   : > { %775 = vst [vmem:[%s752_s4 + $0x18] sm:$0xff] %v774_v11 }
  0x3a   : > { %777 = vst [vmem:[%s752_s4 + $0x20] sm:$0xff] %v776_v12 }
  0x3b   : > { %779 = vst [vmem:[%s752_s4 + $0x28] sm:$0xff] %v778_v13 }
  0x3c   : > { %781 = vst [vmem:[%s752_s4 + $0x30] sm:$0xff] %v780_v14 }
  0x3d   : > { %783 = vst [vmem:[%s752_s4 + $0x38] sm:$0xff] %v782_v15 }
  0x3e PF: > { %p3060_p5 = scmp.ge.s32.totalorder %s3473_s7, 1  ;;  %p788_p6 = scmp.lt.s32.totalorder %s3473_s7, 3 }
  0x40   : > { %p789_p7 = pnand %p3060_p5, %p788_p6 }
  0x42   : > { %792 = sbr.rel (%p789_p7) target bundleno = 2336 (0x920), region = 162 }
  0x47   : > { %s4444_s30 = sld [smem:[#allocation20_spill]]  ;;  %s795_s6 = sand.u32 1, %s3465_s27   ;;  %v3475_v19 = vmov 0   ;;  %vm960_vm0 = vcmask 261120   ;;  %v1710_v60 = vld [vmem:[%s4395_s11 + $0x30] sm:$0xff]  ;;  %v1711_v61 = vld [vmem:[%s4395_s11 + $0x38] sm:$0xff] }
  0x48   : > { %3446 = vset.pattern.permute.xlu2 %v3475_v19  ;;  %3445 = vset.pattern.permute.xlu1 %v3475_v19  ;;  %s3670_s1 = sshll.u32 %s795_s6, 6  ;;  %s4445_s0 = sld [smem:[#allocation19_spill]]  ;;  %v1709_v63 = vld [vmem:[%s4395_s11 + $0x28] sm:$0xff]  ;;  %v1706_v0 = vld [vmem:[%s4395_s11 + $0x10] sm:$0xff]  ;;  %v1708_v1 = vld [vmem:[%s4395_s11 + $0x20] sm:$0xff]  ;;  %vm1247_vm1 = vcmask 523264  }
  0x49   : > { %3444 = vset.pattern.permute.xlu0 %v3475_v19  ;;  %s797_s4 = scalar_lea.vmem [#allocation2], %s3670_s1  ;;  %s4446_s2 = sld [smem:[#allocation22_spill]]  ;;  %v1704_v2 = vld [vmem:[%s4395_s11] sm:$0xff]  ;;  %v1705_v3 = vld [vmem:[%s4395_s11 + $0x8] sm:$0xff]  ;;  %v1707_v4 = vld [vmem:[%s4395_s11 + $0x18] sm:$0xff]  ;;  %vm2966_vm2 = vcmask 1043456  }
  0x4a   : > { %v888_v20 = vld [vmem:[%s797_s4 + $0x20] sm:$0xff]  ;;  %v890_v21 = vld [vmem:[%s797_s4 + $0x30] sm:$0xff]  ;;  %v889_v22 = vld [vmem:[%s797_s4 + $0x28] sm:$0xff]  ;;  %s4447_s9 = sld [smem:[#allocation24_spill]]  ;;  %s4473_s27 = sadd.s32 4294967295, %s3473_s7  }
  0x4b   : > { %v918_v23 = vpack.c.bf16 %v890_v21, %v888_v20  ;;  %v891_v24 = vld [vmem:[%s797_s4 + $0x38] sm:$0xff]  ;;  %v884_v25 = vld [vmem:[%s797_s4] sm:$0xff]  ;;  %v886_v26 = vld [vmem:[%s797_s4 + $0x10] sm:$0xff]  ;;  %s4448_s5 = sld [smem:[#allocation26_spill]]  ;;  %s3063_s28 = sshll.u32 %s4473_s27, 1 }
  0x4c   : > { %v919_v27 = vpack.c.bf16 %v891_v24, %v889_v22  ;;  %v885_v28 = vld [vmem:[%s797_s4 + $0x8] sm:$0xff]  ;;  %v887_v29 = vld [vmem:[%s797_s4 + $0x18] sm:$0xff]  ;;  %v916_v30 = vpack.c.bf16 %v886_v26, %v884_v25  ;;  %v1804_v6 = vld [vmem:[%s4397_s13 + $0x20] sm:$0xff]  ;;  %s4449_s6 = sld [smem:[#allocation21_spill]]  ;;  %s804_s4 = scalar_lea.vmem [#allocation3], %s3670_s1 }
  0x4d   : > { %v1089_v16 = vld [vmem:[%s4444_s30 + $0x30] sm:$0xff]  ;;  %v1087_v17 = vld [vmem:[%s4444_s30 + $0x20] sm:$0xff]  ;;  %991 = vmatpush.bf16.msra.mxu0 %v918_v23  ;;  %v1088_v31 = vld [vmem:[%s4444_s30 + $0x28] sm:$0xff]  ;;  %v917_v34 = vpack.c.bf16 %v887_v29, %v885_v28  ;;  %s4450_s8 = sld [smem:[#allocation23_spill]]  ;;  %p878_p8 = scmp.lt.s32.totalorder %s3063_s28, 3 }
  0x4e   : > { %v1085_v18 = vld [vmem:[%s4444_s30 + $0x10] sm:$0xff]  ;;  %1113 = vperm.xlu1 %3445, %v1087_v17   ;;  %1123 = vperm.xlu0 %3444, %v1089_v16   ;;  %v1090_v32 = vld [vmem:[%s4444_s30 + $0x38] sm:$0xff]  ;;  %v3369_v35 = vld [vmem:[%s4445_s0] sm:$0xff]  ;;  %s4451_s10 = sld [smem:[#allocation25_spill]] }
  0x4f   : > { %1103 = vperm.xlu2 %3446, %v1085_v18   ;;  %1040 = vmatpush.bf16.msra.mxu1 %v919_v27  ;;  %v1086_v33 = vld [vmem:[%s4444_s30 + $0x18] sm:$0xff]  ;;  %v1084_v36 = vld [vmem:[%s4444_s30 + $0x8] sm:$0xff]  ;;  %v1185_v37 = vld [vmem:[%s4446_s2 + $0x30] sm:$0xff]  ;;  %s4452_s29 = sld [smem:[#allocation27_spill]]  ;;  %s4478_s28 = smov (!%p878_p8, %s3063_s28), 3 }
  0x50   : > { %v1083_v38 = vld [vmem:[%s4444_s30] sm:$0xff]  ;;  %v1184_v40 = vld [vmem:[%s4446_s2 + $0x28] sm:$0xff]  ;;  %v1186_v41 = vld [vmem:[%s4446_s2 + $0x38] sm:$0xff]  ;;  %s3064_s3 = sshll.u32 %s4478_s28, 2 }
  0x51   : > { %992 = vmatpush.bf16.msra.mxu0 %v916_v30  ;;  %v1183_v39 = vld [vmem:[%s4446_s2 + $0x20] sm:$0xff]  ;;  %v3370_v42 = vld [vmem:[%s4445_s0 + $0x8] sm:$0xff]  ;;  %v1182_v43 = vld [vmem:[%s4446_s2 + $0x18] sm:$0xff] }
  0x52   : > { %v1179_v44 = vld [vmem:[%s4446_s2] sm:$0xff]  ;;  %v1181_v45 = vld [vmem:[%s4446_s2 + $0x10] sm:$0xff]  ;;  %v1357_v47 = vld [vmem:[%s4447_s9 + $0x38] sm:$0xff] }
  0x53   : > { %1041 = vmatpush.bf16.msra.mxu1 %v917_v34  ;;  %v1356_v46 = vld [vmem:[%s4447_s9 + $0x30] sm:$0xff]  ;;  %v1180_v48 = vld [vmem:[%s4446_s2 + $0x8] sm:$0xff]  ;;  %v1354_v52 = vld [vmem:[%s4447_s9 + $0x20] sm:$0xff] }
  0x54   : > { %3097 = vmatmul.msk.bf16.vlgmr.msra.gmra.mxu0 %vm960_vm0, %v3369_v35  ;;  %v3371_v49 = vld [vmem:[%s4445_s0 + $0x10] sm:$0xff]  ;;  %v1355_v50 = vld [vmem:[%s4447_s9 + $0x28] sm:$0xff]  ;;  %v1350_v53 = vld [vmem:[%s4447_s9] sm:$0xff] }
  0x55   : > { %v1352_v51 = vld [vmem:[%s4447_s9 + $0x10] sm:$0xff]  ;;  %v1351_v54 = vld [vmem:[%s4447_s9 + $0x8] sm:$0xff]  ;;  %v1353_v55 = vld [vmem:[%s4447_s9 + $0x18] sm:$0xff] }
  0x56   : > { %1118 = vperm.xlu1 %3445, %v1088_v31   ;;  %1128 = vperm.xlu0 %3444, %v1090_v32   ;;  %v3372_v56 = vld [vmem:[%s4445_s0 + $0x18] sm:$0xff]  ;;  %v1516_v58 = vld [vmem:[%s4448_s5] sm:$0xff]  ;;  %v1518_v59 = vld [vmem:[%s4448_s5 + $0x10] sm:$0xff] }
  0x57   : > { %1108 = vperm.xlu2 %3446, %v1086_v33   ;;  %3105 = vmatmul.msk.bf16.vlgmr.msra.gmra.mxu1 %vm960_vm0, %v3369_v35  ;;  %v1519_v57 = vld [vmem:[%s4448_s5 + $0x18] sm:$0xff]  ;;  %v1517_v62 = vld [vmem:[%s4448_s5 + $0x8] sm:$0xff]  ;;  %v1806_v7 = vld [vmem:[%s4397_s13 + $0x30] sm:$0xff] }
  0x58   : > { %v1807_v5 = vld [vmem:[%s4397_s13 + $0x38] sm:$0xff]  ;;  %v1802_v8 = vld [vmem:[%s4397_s13 + $0x10] sm:$0xff]  ;;  %v1805_v10 = vld [vmem:[%s4397_s13 + $0x28] sm:$0xff] }
  0x59   : > { %v1803_v9 = vld [vmem:[%s4397_s13 + $0x18] sm:$0xff]  ;;  %v1801_v11 = vld [vmem:[%s4397_s13 + $0x8] sm:$0xff]  ;;  %v2146_v12 = vld [vmem:[%s4399_s15 + $0x30] sm:$0xff] }
  0x5a   : > { %v1800_v13 = vld [vmem:[%s4397_s13] sm:$0xff]  ;;  %v2145_v15 = vld [vmem:[%s4399_s15 + $0x28] sm:$0xff]  ;;  %v2147_v16 = vld [vmem:[%s4399_s15 + $0x38] sm:$0xff] }
  0x5b   : > { %v2144_v14 = vld [vmem:[%s4399_s15 + $0x20] sm:$0xff]  ;;  %v2143_v17 = vld [vmem:[%s4399_s15 + $0x18] sm:$0xff]  ;;  %v2142_v19 = vld [vmem:[%s4399_s15 + $0x10] sm:$0xff] }
  0x5c   : > { %v2140_v18 = vld [vmem:[%s4399_s15] sm:$0xff]  ;;  %v2498_v20 = vld [vmem:[%s4400_s16 + $0x30] sm:$0xff]  ;;  %v2499_v21 = vld [vmem:[%s4400_s16 + $0x38] sm:$0xff] }
  0x5d   : > { %v2141_v22 = vld [vmem:[%s4399_s15 + $0x8] sm:$0xff]  ;;  %v2494_v26 = vld [vmem:[%s4400_s16 + $0x10] sm:$0xff]  ;;  %v2496_v27 = vld [vmem:[%s4400_s16 + $0x20] sm:$0xff] }
  0x5e   : > { %1098 = vperm.xlu1 %3445, %v1084_v36   ;;  %1093 = vperm.xlu0 %3444, %v1083_v38   ;;  %v2497_v25 = vld [vmem:[%s4400_s16 + $0x28] sm:$0xff]  ;;  %v2492_v30 = vld [vmem:[%s4400_s16] sm:$0xff]  ;;  %v2495_v32 = vld [vmem:[%s4400_s16 + $0x18] sm:$0xff] }
  0x5f   : > { %1219 = vperm.xlu2 %3446, %v1185_v37   ;;  %v2493_v31 = vld [vmem:[%s4400_s16 + $0x8] sm:$0xff]  ;;  %v2595_v35 = vld [vmem:[%s4405_s21 + $0x38] sm:$0xff]  ;;  %v2592_v36 = vld [vmem:[%s4405_s21 + $0x20] sm:$0xff] }
  0x60   : > { %v2594_v37 = vld [vmem:[%s4405_s21 + $0x30] sm:$0xff] }
  0x64   : > { %3098 = vmatmul.msk.bf16.gmra.mxu0 %vm960_vm0, %v3370_v42 }
  0x66   : > { %1209 = vperm.xlu1 %3445, %v1183_v39   ;;  %1224 = vperm.xlu0 %3444, %v1186_v41   ;;  %v2591_v41 = vld [vmem:[%s4405_s21 + $0x18] sm:$0xff] }
  0x67   : > { %1214 = vperm.xlu2 %3446, %v1184_v40   ;;  %3106 = vmatmul.msk.bf16.gmra.mxu1 %vm960_vm0, %v3370_v42  ;;  %v2590_v40 = vld [vmem:[%s4405_s21 + $0x10] sm:$0xff]  ;;  %v2593_v42 = vld [vmem:[%s4405_s21 + $0x28] sm:$0xff] }
  0x6e   : > { %1204 = vperm.xlu1 %3445, %v1182_v43   ;;  %1199 = vperm.xlu0 %3444, %v1181_v45   ;;  %v2589_v45 = vld [vmem:[%s4405_s21 + $0x8] sm:$0xff] }
  0x6f   : > { %1189 = vperm.xlu2 %3446, %v1179_v44  }
  0x74   : > { %3099 = vmatmul.msk.bf16.gmra.mxu0 %vm960_vm0, %v3371_v49 }
  0x76   : > { %1390 = vperm.xlu1 %3445, %v1356_v46   ;;  %1194 = vperm.xlu0 %3444, %v1180_v48   ;;  %v2764_v46 = vld [vmem:[%s4407_s23 + $0x30] sm:$0xff] }
  0x77   : > { %1395 = vperm.xlu2 %3446, %v1357_v47   ;;  %3107 = vmatmul.msk.bf16.gmra.mxu1 %vm960_vm0, %v3371_v49  ;;  %v2588_v47 = vld [vmem:[%s4405_s21] sm:$0xff] }
  0x7e   : > { %1385 = vperm.xlu1 %3445, %v1355_v50   ;;  %1380 = vperm.xlu0 %3444, %v1354_v52   ;;  %v2762_v52 = vld [vmem:[%s4407_s23 + $0x20] sm:$0xff] }
  0x7f   : > { %1370 = vperm.xlu2 %3446, %v1352_v51  }
  0x84   : > { %3100 = vmatmul.msk.bf16.gmra.mxu0 %vm960_vm0, %v3372_v56 }
  0x86   : > { %1360 = vperm.xlu1 %3445, %v1350_v53   ;;  %1375 = vperm.xlu0 %3444, %v1353_v55   ;;  %v2763_v53 = vld [vmem:[%s4407_s23 + $0x28] sm:$0xff] }
  0x87   : > { %1365 = vperm.xlu2 %3446, %v1351_v54   ;;  %3108 = vmatmul.msk.bf16.gmra.mxu1 %vm960_vm0, %v3372_v56  ;;  %v2765_v54 = vld [vmem:[%s4407_s23 + $0x38] sm:$0xff] }
  0x8e   : > { %1537 = vperm.xlu1 %3445, %v1519_v57   ;;  %1532 = vperm.xlu0 %3444, %v1518_v59   ;;  %v2761_v59 = vld [vmem:[%s4407_s23 + $0x18] sm:$0xff] }
  0x8f   : > { %1522 = vperm.xlu2 %3446, %v1516_v58  }
  0x96   : > { %1744 = vperm.xlu1 %3445, %v1710_v60   ;;  %1527 = vperm.xlu0 %3444, %v1517_v62   ;;  %v2758_v60 = vld [vmem:[%s4407_s23] sm:$0xff] }
  0x97   : > { %1749 = vperm.xlu2 %3446, %v1711_v61   ;;  %v2760_v61 = vld [vmem:[%s4407_s23 + $0x10] sm:$0xff] }
  0x9e   : > { %1739 = vperm.xlu1 %3445, %v1709_v63   ;;  %1734 = vperm.xlu0 %3444, %v1708_v1  }
  0x9f   : > { %1724 = vperm.xlu2 %3446, %v1706_v0  }
  0xa6   : > { %1714 = vperm.xlu1 %3445, %v1704_v2   ;;  %1729 = vperm.xlu0 %3444, %v1707_v4  }
  0xa7   : > { %1719 = vperm.xlu2 %3446, %v1705_v3  }
  0xa9   : > { %v1104_v56 = vpop.permute.xlu2 %1103 }
  0xae   : > { %1845 = vperm.xlu1 %3445, %v1807_v5   ;;  %1840 = vperm.xlu0 %3444, %v1806_v7  }
  0xaf   : > { %1830 = vperm.xlu2 %3446, %v1804_v6  }
  0xb1   : > { %v1109_v6 = vpop.permute.xlu2 %1108 }
  0xb6   : > { %1820 = vperm.xlu1 %3445, %v1802_v8   ;;  %1835 = vperm.xlu0 %3444, %v1805_v10  }
  0xb7   : > { %1825 = vperm.xlu2 %3446, %v1803_v9  }
  0xbe   : > { %1815 = vperm.xlu1 %3445, %v1801_v11   ;;  %1810 = vperm.xlu0 %3444, %v1800_v13  }
  0xbf   : > { %2180 = vperm.xlu2 %3446, %v2146_v12  }
  0xc0   : > { %v1114_v50 = vpop.permute.xlu1 %1113  ;;  %v1124_v51 = vpop.permute.xlu0 %1123 }
  0xc6   : > { %2170 = vperm.xlu1 %3445, %v2144_v14   ;;  %2185 = vperm.xlu0 %3444, %v2147_v16  }
  0xc7   : > { %2175 = vperm.xlu2 %3446, %v2145_v15  }
  0xc8   : > { %v1119_v58 = vpop.permute.xlu1 %1118  ;;  %v1129_v62 = vpop.permute.xlu0 %1128 }
  0xce   : > { %2165 = vperm.xlu1 %3445, %v2143_v17   ;;  %2160 = vperm.xlu0 %3444, %v2142_v19   ;;  %v2242_v17 = vld [vmem:[%s4402_s18 + $0x30] sm:$0xff]  ;;  %v2243_v19 = vld [vmem:[%s4402_s18 + $0x38] sm:$0xff] }
  0xcf   : > { %2150 = vperm.xlu2 %3446, %v2140_v18  }
  0xd1   : > { %v3846_v23 = vpop.f32.mrf.mxu0 }
  0xd4   : > { %v3848_v24 = vpop.f32.mrf.mxu1 }
  0xd6   : > { %2532 = vperm.xlu1 %3445, %v2498_v20   ;;  %2155 = vperm.xlu0 %3444, %v2141_v22   ;;  %v1099_v20 = vpop.permute.xlu1 %1098 }
  0xd7   : > { %2537 = vperm.xlu2 %3446, %v2499_v21  }
  0xd9   : > { %v3859_v28 = vpop.f32.mrf.mxu0 }
  0xdc   : > { %v3861_v29 = vpop.f32.mrf.mxu1 }
  0xde   : > { %2527 = vperm.xlu1 %3445, %v2497_v25   ;;  %2522 = vperm.xlu0 %3444, %v2496_v27   ;;  %v2759_v27 = vld [vmem:[%s4407_s23 + $0x8] sm:$0xff] }
  0xdf   : > { %2512 = vperm.xlu2 %3446, %v2494_v26  }
  0xe1   : > { %v3872_v33 = vpop.f32.mrf.mxu0 }
  0xe2   : > { %v1135_v18 = vadd.f32 %v1104_v56, %v3872_v33 }
  0xe4   : > { %v3874_v34 = vpop.f32.mrf.mxu1 }
  0xe6   : > { %2502 = vperm.xlu1 %3445, %v2492_v30   ;;  %2517 = vperm.xlu0 %3444, %v2495_v32   ;;  %v1133_v30 = vadd.f32 %v1099_v20, %v3859_v28  ;;  %v1136_v32 = vadd.f32 %v1104_v56, %v3874_v34  ;;  %v3379_v56 = vld [vmem:[%s4449_s6 + $0x10] sm:$0xff] }
  0xe7   : > { %2507 = vperm.xlu2 %3446, %v2493_v31   ;;  %v1094_v31 = vpop.permute.xlu0 %1093 }
  0xe8   : > { %v1132_v28 = vadd.f32 %v1094_v31, %v3848_v24  ;;  %v2240_v24 = vld [vmem:[%s4402_s18 + $0x20] sm:$0xff] }
  0xe9   : > { %v1001_v38 = vpop.f32.mrf.mxu0 }
  0xea   : > { %v1137_v11 = vadd.f32 %v1109_v6, %v1001_v38  ;;  %v1134_v38 = vadd.f32 %v1099_v20, %v3861_v29 }
  0xec   : > { %v1050_v39 = vpop.f32.mrf.mxu1  ;;  %v1153_v33 = vmax.f32 %v1137_v11, 0.0  ;;  %v1150_v29 = vmax.f32 %v1134_v38, 0.0 }
  0xed   : > { %v1138_v21 = vadd.f32 %v1109_v6, %v1050_v39  ;;  %v1151_v39 = vmax.f32 %v1135_v18, 0.0 }
  0xee   : > { %2633 = vperm.xlu1 %3445, %v2595_v35   ;;  %2628 = vperm.xlu0 %3444, %v2594_v37   ;;  %v1131_v37 = vadd.f32 %v1094_v31, %v3846_v23  ;;  %v2238_v23 = vld [vmem:[%s4402_s18 + $0x10] sm:$0xff] }
  0xef   : > { %2618 = vperm.xlu2 %3446, %v2592_v36   ;;  %v1173_v34 = vpack.c.bf16 %v1153_v33, %v1151_v39  ;;  %v1225_v6 = vpop.permute.xlu0 %1224 }
  0xf1   : > { %v1004_v43 = vpop.f32.mrf.mxu0 }
  0xf2   : > { %v1139_v4 = vadd.f32 %v1114_v50, %v1004_v43  ;;  %v1152_v43 = vmax.f32 %v1136_v32, 0.0 }
  0xf4   : > { %v1053_v44 = vpop.f32.mrf.mxu1  ;;  %v1155_v22 = vmax.f32 %v1139_v4, 0.0 }
  0xf5   : > { %v1140_v12 = vadd.f32 %v1114_v50, %v1053_v44  ;;  %v2241_v44 = vld [vmem:[%s4402_s18 + $0x28] sm:$0xff] }
  0xf6   : > { %2608 = vperm.xlu1 %3445, %v2590_v40   ;;  %2623 = vperm.xlu0 %3444, %v2593_v42   ;;  %v1154_v40 = vmax.f32 %v1138_v21, 0.0  ;;  %v1149_v42 = vmax.f32 %v1133_v30, 0.0 }
  0xf7   : > { %2613 = vperm.xlu2 %3446, %v2591_v41   ;;  %v1156_v35 = vmax.f32 %v1140_v12, 0.0  ;;  %v1200_v11 = vpop.permute.xlu0 %1199 }
  0xf9   : > { %v1006_v48 = vpop.f32.mrf.mxu0 }
  0xfa   : > { %v1141_v1 = vadd.f32 %v1119_v58, %v1006_v48 }
  0xfc   : > { %v1055_v49 = vpop.f32.mrf.mxu1  ;;  %v1157_v13 = vmax.f32 %v1141_v1, 0.0 }
  0xfd   : > { %v1142_v7 = vadd.f32 %v1119_v58, %v1055_v49  ;;  %v3377_v49 = vld [vmem:[%s4449_s6] sm:$0xff] }
  0xfe   : > { %2603 = vperm.xlu1 %3445, %v2589_v45   ;;  %2598 = vperm.xlu0 %3444, %v2588_v47   ;;  %v1175_v36 = vpack.c.bf16 %v1157_v13, %v1155_v22  ;;  %v1147_v45 = vmax.f32 %v1131_v37, 0.0  ;;  %v1148_v47 = vmax.f32 %v1132_v28, 0.0 }
  0xff   : > { %2798 = vperm.xlu2 %3446, %v2764_v46   ;;  %v1158_v25 = vmax.f32 %v1142_v7, 0.0  ;;  %v1174_v46 = vpack.c.bf16 %v1154_v40, %v1152_v43  ;;  %v1220_v7 = vpop.permute.xlu2 %1219  ;;  %v1195_v37 = vpop.permute.xlu0 %1194 }
 0x100   : > { %v1171_v48 = vpack.c.bf16 %v1149_v42, %v1147_v45  ;;  %v1172_v50 = vpack.c.bf16 %v1150_v29, %v1148_v47 }
 0x101   : > { %v1009_v55 = vpop.f32.mrf.mxu0  ;;  %v1176_v41 = vpack.c.bf16 %v1158_v25, %v1156_v35 }
 0x102   : > { %v1143_v63 = vadd.f32 %v1124_v51, %v1009_v55  ;;  %v3378_v55 = vld [vmem:[%s4449_s6 + $0x8] sm:$0xff] }
 0x104   : > { %v1058_v57 = vpop.f32.mrf.mxu1  ;;  %v1159_v8 = vmax.f32 %v1143_v63, 0.0 }
 0x105   : > { %v1144_v2 = vadd.f32 %v1124_v51, %v1058_v57  ;;  %v2236_v51 = vld [vmem:[%s4402_s18] sm:$0xff]  ;;  %v3380_v57 = vld [vmem:[%s4449_s6 + $0x18] sm:$0xff] }
 0x106   : > { %2788 = vperm.xlu1 %3445, %v2762_v52   ;;  %2803 = vperm.xlu0 %3444, %v2765_v54   ;;  %v2237_v52 = vld [vmem:[%s4402_s18 + $0x8] sm:$0xff]  ;;  %v2929_v54 = vld [vmem:[%s4409_s25] sm:$0xf] }
 0x107   : > { %2793 = vperm.xlu2 %3446, %v2763_v53   ;;  %v1160_v14 = vmax.f32 %v1144_v2, 0.0  ;;  %v2239_v53 = vld [vmem:[%s4402_s18 + $0x18] sm:$0xff]  ;;  %v1215_v12 = vpop.permute.xlu2 %1214 }
 0x109   : > { %v1011_v0 = vpop.f32.mrf.mxu0 }
 0x10a   : > { %v1145_v3 = vadd.f32 %v1129_v62, %v1011_v0 }
 0x10c   : > { %v1060_v5 = vpop.f32.mrf.mxu1  ;;  %v1161_v10 = vmax.f32 %v1145_v3, 0.0 }
 0x10d   : > { %v1146_v9 = vadd.f32 %v1129_v62, %v1060_v5 }
 0x10e   : > { %2783 = vperm.xlu1 %3445, %v2761_v59   ;;  %2778 = vperm.xlu0 %3444, %v2760_v61   ;;  %v1177_v15 = vpack.c.bf16 %v1161_v10, %v1159_v8 }
 0x10f   : > { %2768 = vperm.xlu2 %3446, %v2758_v60   ;;  %v1162_v16 = vmax.f32 %v1146_v9, 0.0  ;;  %v1210_v9 = vpop.permute.xlu1 %1209  ;;  %v1190_v42 = vpop.permute.xlu2 %1189 }
 0x110   : > { %1264 = vmatpush.bf16.msra.mxu2 %v1177_v15 }
 0x111   : > { %v1178_v26 = vpack.c.bf16 %v1162_v16, %v1160_v14 }
 0x113   : > { %1293 = vmatpush.bf16.msra.mxu3 %v1178_v26 }
 0x114   : > { %1265 = vmatpush.bf16.msra.mxu2 %v1175_v36 }
 0x116   : > { %2276 = vperm.xlu1 %3445, %v2242_v17   ;;  %2773 = vperm.xlu0 %3444, %v2759_v27  }
 0x117   : > { %2281 = vperm.xlu2 %3446, %v2243_v19   ;;  %1294 = vmatpush.bf16.msra.mxu3 %v1176_v41  ;;  %v1205_v20 = vpop.permute.xlu1 %1204 }
 0x118   : > { %1266 = vmatpush.bf16.msra.mxu2 %v1173_v34 }
 0x11b   : > { %1295 = vmatpush.bf16.msra.mxu3 %v1174_v46 }
 0x11c   : > { %1267 = vmatpush.bf16.msra.mxu2 %v1171_v48 }
 0x11e   : > { %2271 = vperm.xlu1 %3445, %v2241_v44   ;;  %2266 = vperm.xlu0 %3444, %v2240_v24  }
 0x11f   : > { %2256 = vperm.xlu2 %3446, %v2238_v23   ;;  %1296 = vmatpush.bf16.msra.mxu3 %v1172_v50 }
 0x120   : > { %3129 = vmatmul.msk.bf16.vlgmr.msra.gmra.mxu2 %vm1247_vm1, %v3377_v49 }
 0x122   : > { %3133 = vmatmul.msk.bf16.vlgmr.msra.gmra.mxu3 %vm1247_vm1, %v3377_v49 }
 0x126   : > { %2246 = vperm.xlu1 %3445, %v2236_v51   ;;  %2261 = vperm.xlu0 %3444, %v2239_v53  }
 0x127   : > { %2251 = vperm.xlu2 %3446, %v2237_v52  }
 0x12e   : > { %2932 = vperm.xlu0 %3444, %v2929_v54  }
 0x130   : > { %3130 = vmatmul.msk.bf16.gmra.mxu2 %vm1247_vm1, %v3378_v55 }
 0x132   : > { %3134 = vmatmul.msk.bf16.gmra.mxu3 %vm1247_vm1, %v3378_v55 }
 0x140   : > { %3131 = vmatmul.msk.bf16.gmra.mxu2 %vm1247_vm1, %v3379_v56 }
 0x142   : > { %3135 = vmatmul.msk.bf16.gmra.mxu3 %vm1247_vm1, %v3379_v56 }
 0x150   : > { %3132 = vmatmul.msk.bf16.gmra.mxu2 %vm1247_vm1, %v3380_v57 }
 0x152   : > { %3136 = vmatmul.msk.bf16.gmra.mxu3 %vm1247_vm1, %v3380_v57  ;;  %v3381_v57 = vld [vmem:[%s4450_s8] sm:$0xff] }
 0x1a3   : > { %v1269_v58 = vpop.f32.mrf.mxu2 }
 0x1a4   : > { %v1270_v45 = vadd.f32 %v1269_v58, %v1190_v42 }
 0x1a5   : > { %v1298_v59 = vpop.f32.mrf.mxu3 }
 0x1a6   : > { %v1299_v48 = vadd.f32 %v1298_v59, %v1190_v42  ;;  %v1318_v52 = vmax.f32 %v1270_v45, 0.0  ;;  %v3382_v59 = vld [vmem:[%s4450_s8 + $0x8] sm:$0xff] }
 0x1a8   : > { %v1319_v55 = vmax.f32 %v1299_v48, 0.0 }
 0x1ab   : > { %v1271_v60 = vpop.f32.mrf.mxu2 }
 0x1ac   : > { %v1272_v28 = vadd.f32 %v1271_v60, %v1195_v37  ;;  %v3383_v60 = vld [vmem:[%s4450_s8 + $0x10] sm:$0xff] }
 0x1ad   : > { %v1300_v61 = vpop.f32.mrf.mxu3 }
 0x1ae   : > { %v1301_v29 = vadd.f32 %v1300_v61, %v1195_v37  ;;  %v1320_v49 = vmax.f32 %v1272_v28, 0.0  ;;  %v3384_v61 = vld [vmem:[%s4450_s8 + $0x18] sm:$0xff] }
 0x1b0   : > { %v1321_v53 = vmax.f32 %v1301_v29, 0.0  ;;  %v1342_v56 = vpack.c.bf16 %v1320_v49, %v1318_v52 }
 0x1b2   : > { %v1343_v58 = vpack.c.bf16 %v1321_v53, %v1319_v55 }
 0x1b3   : > { %v1274_v62 = vpop.f32.mrf.mxu2 }
 0x1b4   : > { %v1275_v36 = vadd.f32 %v1274_v62, %v1200_v11  ;;  %v3373_v62 = vld [vmem:[%s4445_s0 + $0x20] sm:$0xff] }
 0x1b5   : > { %v1303_v63 = vpop.f32.mrf.mxu3  ;;  %3109 = vmatmul.msk.bf16.gmra.mxu1 %vm960_vm0, %v3373_v62  ;;  %3101 = vmatmul.msk.bf16.gmra.mxu0 %vm960_vm0, %v3373_v62 }
 0x1b6   : > { %v1304_v43 = vadd.f32 %v1303_v63, %v1200_v11  ;;  %v1322_v46 = vmax.f32 %v1275_v36, 0.0  ;;  %v3374_v63 = vld [vmem:[%s4445_s0 + $0x28] sm:$0xff] }
 0x1b8   : > { %v1323_v50 = vmax.f32 %v1304_v43, 0.0 }
 0x1bb   : > { %v1276_v0 = vpop.f32.mrf.mxu2 }
 0x1bc   : > { %v1277_v27 = vadd.f32 %v1276_v0, %v1205_v20 }
 0x1bd   : > { %v1305_v1 = vpop.f32.mrf.mxu3 }
 0x1be   : > { %v1306_v38 = vadd.f32 %v1305_v1, %v1205_v20  ;;  %v1324_v34 = vmax.f32 %v1277_v27, 0.0 }
 0x1c0   : > { %v1325_v24 = vmax.f32 %v1306_v38, 0.0  ;;  %v1344_v51 = vpack.c.bf16 %v1324_v34, %v1322_v46 }
 0x1c2   : > { %v1345_v54 = vpack.c.bf16 %v1325_v24, %v1323_v50 }
 0x1c3   : > { %v1279_v2 = vpop.f32.mrf.mxu2 }
 0x1c4   : > { %v1280_v18 = vadd.f32 %v1279_v2, %v1210_v9  ;;  %v3375_v2 = vld [vmem:[%s4445_s0 + $0x30] sm:$0xff] }
 0x1c5   : > { %v1308_v3 = vpop.f32.mrf.mxu3  ;;  %3110 = vmatmul.msk.bf16.gmra.mxu1 %vm960_vm0, %v3374_v63  ;;  %3102 = vmatmul.msk.bf16.gmra.mxu0 %vm960_vm0, %v3374_v63 }
 0x1c6   : > { %v1309_v30 = vadd.f32 %v1308_v3, %v1210_v9  ;;  %v1326_v39 = vmax.f32 %v1280_v18, 0.0 }
 0x1c8   : > { %v1327_v44 = vmax.f32 %v1309_v30, 0.0 }
 0x1cb   : > { %v1281_v4 = vpop.f32.mrf.mxu2 }
 0x1cc   : > { %v1282_v15 = vadd.f32 %v1281_v4, %v1215_v12 }
 0x1cd   : > { %v1310_v5 = vpop.f32.mrf.mxu3 }
 0x1ce   : > { %v1311_v21 = vadd.f32 %v1310_v5, %v1215_v12  ;;  %v1328_v31 = vmax.f32 %v1282_v15, 0.0  ;;  %v1391_v15 = vpop.permute.xlu1 %1390 }
 0x1d0   : > { %v1329_v40 = vmax.f32 %v1311_v21, 0.0  ;;  %v1346_v23 = vpack.c.bf16 %v1328_v31, %v1326_v39 }
 0x1d2   : > { %v1347_v47 = vpack.c.bf16 %v1329_v40, %v1327_v44 }
 0x1d3   : > { %v1284_v8 = vpop.f32.mrf.mxu2 }
 0x1d4   : > { %v1285_v13 = vadd.f32 %v1284_v8, %v1220_v7 }
 0x1d5   : > { %v1313_v10 = vpop.f32.mrf.mxu3  ;;  %3111 = vmatmul.msk.bf16.gmra.mxu1 %vm960_vm0, %v3375_v2  ;;  %3103 = vmatmul.msk.bf16.gmra.mxu0 %vm960_vm0, %v3375_v2 }
 0x1d6   : > { %v1314_v16 = vadd.f32 %v1313_v10, %v1220_v7  ;;  %v1330_v22 = vmax.f32 %v1285_v13, 0.0  ;;  %v3376_v7 = vld [vmem:[%s4445_s0 + $0x38] sm:$0xff]  ;;  %v1386_v20 = vpop.permute.xlu1 %1385 }
 0x1d8   : > { %v1331_v32 = vmax.f32 %v1314_v16, 0.0 }
 0x1db   : > { %v1286_v14 = vpop.f32.mrf.mxu2 }
 0x1dc   : > { %v1287_v17 = vadd.f32 %v1286_v14, %v1225_v6  ;;  %v1396_v14 = vpop.permute.xlu2 %1395 }
 0x1dd   : > { %v1315_v19 = vpop.f32.mrf.mxu3 }
 0x1de   : > { %v1332_v25 = vmax.f32 %v1287_v17, 0.0  ;;  %v1316_v26 = vadd.f32 %v1315_v19, %v1225_v6  ;;  %v1381_v17 = vpop.permute.xlu0 %1380  ;;  %v1361_v24 = vpop.permute.xlu1 %1360 }
 0x1e0   : > { %v1333_v33 = vmax.f32 %v1316_v26, 0.0  ;;  %v1348_v35 = vpack.c.bf16 %v1332_v25, %v1330_v22 }
 0x1e2   : > { %1434 = vmatpush.bf16.msrb.mxu2 %v1348_v35  ;;  %v1349_v41 = vpack.c.bf16 %v1333_v33, %v1331_v32 }
 0x1e4   : > { %1463 = vmatpush.bf16.msrb.mxu3 %v1349_v41  ;;  %v1371_v19 = vpop.permute.xlu2 %1370 }
 0x1e5   : > { %3112 = vmatmul.msk.bf16.gmra.mxu1 %vm960_vm0, %v3376_v7  ;;  %3104 = vmatmul.msk.bf16.gmra.mxu0 %vm960_vm0, %v3376_v7 }
 0x1e6   : > { %1435 = vmatpush.bf16.msrb.mxu2 %v1346_v23  ;;  %v1376_v32 = vpop.permute.xlu0 %1375 }
 0x1e8   : > { %1464 = vmatpush.bf16.msrb.mxu3 %v1347_v47 }
 0x1ea   : > { %1436 = vmatpush.bf16.msrb.mxu2 %v1344_v51 }
 0x1ec   : > { %1465 = vmatpush.bf16.msrb.mxu3 %v1345_v54  ;;  %v1366_v34 = vpop.permute.xlu2 %1365 }
 0x1ee   : > { %1437 = vmatpush.bf16.msrb.mxu2 %v1342_v56 }
 0x1f0   : > { %1466 = vmatpush.bf16.msrb.mxu3 %v1343_v58 }
 0x1f1   : > { %3153 = vmatmul.msk.bf16.vlgmr.msrb.gmra.mxu2 %vm1247_vm1, %v3381_v57 }
 0x1f3   : > { %3157 = vmatmul.msk.bf16.vlgmr.msrb.gmra.mxu3 %vm1247_vm1, %v3381_v57 }
 0x201   : > { %3154 = vmatmul.msk.bf16.gmra.mxu2 %vm1247_vm1, %v3382_v59 }
 0x203   : > { %3158 = vmatmul.msk.bf16.gmra.mxu3 %vm1247_vm1, %v3382_v59 }
 0x211   : > { %3155 = vmatmul.msk.bf16.gmra.mxu2 %vm1247_vm1, %v3383_v60 }
 0x213   : > { %3159 = vmatmul.msk.bf16.gmra.mxu3 %vm1247_vm1, %v3383_v60 }
 0x221   : > { %3156 = vmatmul.msk.bf16.gmra.mxu2 %vm1247_vm1, %v3384_v61 }
 0x223   : > { %3160 = vmatmul.msk.bf16.gmra.mxu3 %vm1247_vm1, %v3384_v61 }
 0x274   : > { %v1439_v0 = vpop.f32.mrf.mxu2 }
 0x275   : > { %v1440_v51 = vadd.f32 %v1439_v0, %v1361_v24  ;;  %v3385_v0 = vld [vmem:[%s4451_s10] sm:$0xff] }
 0x276   : > { %v1468_v1 = vpop.f32.mrf.mxu3 }
 0x277   : > { %v1469_v56 = vadd.f32 %v1468_v1, %v1361_v24  ;;  %v1488_v60 = vmax.f32 %v1440_v51, 0.0  ;;  %v3386_v1 = vld [vmem:[%s4451_s10 + $0x8] sm:$0xff]  ;;  %v3387_v51 = vld [vmem:[%s4452_s29] sm:$0xff] }
 0x279   : > { %v1489_v63 = vmax.f32 %v1469_v56, 0.0 }
 0x27c   : > { %v1441_v3 = vpop.f32.mrf.mxu2 }
 0x27d   : > { %v1442_v46 = vadd.f32 %v1441_v3, %v1366_v34 }
 0x27e   : > { %v1470_v4 = vpop.f32.mrf.mxu3 }
 0x27f   : > { %v1471_v52 = vadd.f32 %v1470_v4, %v1366_v34  ;;  %v1490_v57 = vmax.f32 %v1442_v46, 0.0  ;;  %v4027_v4 = vpop.f32.mrf.mxu0 }
 0x281   : > { %v1491_v61 = vmax.f32 %v1471_v52, 0.0  ;;  %v1508_v2 = vpack.c.bf16 %v1490_v57, %v1488_v60 }
 0x283   : > { %v1509_v3 = vpack.c.bf16 %v1491_v61, %v1489_v63 }
 0x284   : > { %v1444_v5 = vpop.f32.mrf.mxu2 }
 0x285   : > { %v1445_v43 = vadd.f32 %v1444_v5, %v1371_v19  ;;  %v4029_v5 = vpop.f32.mrf.mxu1 }
 0x286   : > { %v1473_v6 = vpop.f32.mrf.mxu3 }
 0x287   : > { %v1474_v47 = vadd.f32 %v1473_v6, %v1371_v19  ;;  %v1492_v53 = vmax.f32 %v1445_v43, 0.0  ;;  %v4031_v6 = vpop.f32.mrf.mxu0 }
 0x289   : > { %v1493_v58 = vmax.f32 %v1474_v47, 0.0 }
 0x28c   : > { %v1446_v8 = vpop.f32.mrf.mxu2 }
 0x28d   : > { %v1447_v38 = vadd.f32 %v1446_v8, %v1376_v32  ;;  %v4033_v7 = vpop.f32.mrf.mxu1 }
 0x28e   : > { %v1475_v9 = vpop.f32.mrf.mxu3 }
 0x28f   : > { %v1476_v44 = vadd.f32 %v1475_v9, %v1376_v32  ;;  %v1494_v48 = vmax.f32 %v1447_v38, 0.0  ;;  %v4035_v8 = vpop.f32.mrf.mxu0 }
 0x291   : > { %v1495_v54 = vmax.f32 %v1476_v44, 0.0  ;;  %v1510_v59 = vpack.c.bf16 %v1494_v48, %v1492_v53  ;;  %v3388_v53 = vld [vmem:[%s4452_s29 + $0x8] sm:$0xff] }
 0x293   : > { %v1511_v62 = vpack.c.bf16 %v1495_v54, %v1493_v58  ;;  %v3389_v54 = vld [vmem:[%s4452_s29 + $0x10] sm:$0xff] }
 0x294   : > { %v1449_v10 = vpop.f32.mrf.mxu2 }
 0x295   : > { %v1450_v30 = vadd.f32 %v1449_v10, %v1381_v17  ;;  %v4037_v9 = vpop.f32.mrf.mxu1 }
 0x296   : > { %v1478_v11 = vpop.f32.mrf.mxu3 }
 0x297   : > { %v1479_v39 = vadd.f32 %v1478_v11, %v1381_v17  ;;  %v1496_v23 = vmax.f32 %v1450_v30, 0.0  ;;  %v4039_v10 = vpop.f32.mrf.mxu0 }
 0x299   : > { %v1497_v49 = vmax.f32 %v1479_v39, 0.0 }
 0x29c   : > { %v1451_v12 = vpop.f32.mrf.mxu2 }
 0x29d   : > { %v1452_v25 = vadd.f32 %v1451_v12, %v1386_v20  ;;  %v4041_v11 = vpop.f32.mrf.mxu1 }
 0x29e   : > { %v1480_v13 = vpop.f32.mrf.mxu3 }
 0x29f   : > { %v1481_v33 = vadd.f32 %v1480_v13, %v1386_v20  ;;  %v1498_v40 = vmax.f32 %v1452_v25, 0.0  ;;  %v4043_v12 = vpop.f32.mrf.mxu0 }
 0x2a1   : > { %v1499_v45 = vmax.f32 %v1481_v33, 0.0  ;;  %v1512_v50 = vpack.c.bf16 %v1498_v40, %v1496_v23 }
 0x2a3   : > { %v1513_v55 = vpack.c.bf16 %v1499_v45, %v1497_v49 }
 0x2a4   : > { %v1454_v16 = vpop.f32.mrf.mxu2 }
 0x2a5   : > { %v1455_v21 = vadd.f32 %v1454_v16, %v1391_v15  ;;  %v4045_v13 = vpop.f32.mrf.mxu1 }
 0x2a6   : > { %v1483_v18 = vpop.f32.mrf.mxu3 }
 0x2a7   : > { %v1484_v26 = vadd.f32 %v1483_v18, %v1391_v15  ;;  %v1500_v35 = vmax.f32 %v1455_v21, 0.0 }
 0x2a9   : > { %v1501_v41 = vmax.f32 %v1484_v26, 0.0  ;;  %v1533_v26 = vpop.permute.xlu0 %1532 }
 0x2ac   : > { %v1456_v22 = vpop.f32.mrf.mxu2 }
 0x2ad   : > { %v1457_v27 = vadd.f32 %v1456_v22, %v1396_v14  ;;  %v4049_v15 = vpop.f32.mrf.mxu1 }
 0x2ae   : > { %v1485_v31 = vpop.f32.mrf.mxu3 }
 0x2af   : > { %v1502_v36 = vmax.f32 %v1457_v27, 0.0  ;;  %v1486_v37 = vadd.f32 %v1485_v31, %v1396_v14  ;;  %v4047_v14 = vpop.f32.mrf.mxu0  ;;  %v1538_v31 = vpop.permute.xlu1 %1537 }
 0x2b1   : > { %v1503_v28 = vmax.f32 %v1486_v37, 0.0  ;;  %v1514_v42 = vpack.c.bf16 %v1502_v36, %v1500_v35  ;;  %v1528_v33 = vpop.permute.xlu0 %1527  ;;  %v1523_v36 = vpop.permute.xlu2 %1522 }
 0x2b3   : > { %1560 = vmatpush.bf16.msrb.mxu0 %v1514_v42  ;;  %v1515_v29 = vpack.c.bf16 %v1503_v28, %v1501_v41 }
 0x2b5   : > { %1579 = vmatpush.bf16.msrb.mxu1 %v1515_v29  ;;  %v4053_v17 = vpop.f32.mrf.mxu1 }
 0x2b7   : > { %1561 = vmatpush.bf16.msrb.mxu0 %v1512_v50  ;;  %v4051_v16 = vpop.f32.mrf.mxu0 }
 0x2b9   : > { %1580 = vmatpush.bf16.msrb.mxu1 %v1513_v55  ;;  %v3390_v55 = vld [vmem:[%s4452_s29 + $0x18] sm:$0xff] }
 0x2bb   : > { %1562 = vmatpush.bf16.msrb.mxu0 %v1510_v59 }
 0x2bd   : > { %1581 = vmatpush.bf16.msrb.mxu1 %v1511_v62  ;;  %v4057_v19 = vpop.f32.mrf.mxu1 }
 0x2bf   : > { %1563 = vmatpush.bf16.msrb.mxu0 %v1508_v2  ;;  %v4055_v18 = vpop.f32.mrf.mxu0 }
 0x2c1   : > { %1582 = vmatpush.bf16.msrb.mxu1 %v1509_v3 }
 0x2c2   : > { %3169 = vmatmul.msk.bf16.vlgmr.msrb.gmra.mxu0 %vm1247_vm1, %v3385_v0 }
 0x2c4   : > { %3171 = vmatmul.msk.bf16.vlgmr.msrb.gmra.mxu1 %vm1247_vm1, %v3385_v0 }
 0x2d2   : > { %3170 = vmatmul.msk.bf16.gmra.mxu0 %vm1247_vm1, %v3386_v1 }
 0x2d4   : > { %3172 = vmatmul.msk.bf16.gmra.mxu1 %vm1247_vm1, %v3386_v1 }
 0x33f   : > { %v1565_v20 = vpop.f32.mrf.mxu0 }
 0x340   : > { %v1566_v40 = vadd.f32 %v1565_v20, %v1523_v36  ;;  %v1750_v20 = vpop.permute.xlu2 %1749 }
 0x341   : > { %v1584_v21 = vpop.f32.mrf.mxu1 }
 0x342   : > { %v1585_v44 = vadd.f32 %v1584_v21, %v1523_v36  ;;  %v1594_v24 = vmax.f32 %v1566_v40, 0.0  ;;  %v1745_v21 = vpop.permute.xlu1 %1744 }
 0x344   : > { %v1595_v49 = vmax.f32 %v1585_v44, 0.0 }
 0x347   : > { %v1567_v22 = vpop.f32.mrf.mxu0 }
 0x348   : > { %v1568_v37 = vadd.f32 %v1567_v22, %v1528_v33 }
 0x349   : > { %v1586_v25 = vpop.f32.mrf.mxu1 }
 0x34a   : > { %v1587_v28 = vadd.f32 %v1586_v25, %v1528_v33  ;;  %v1596_v23 = vmax.f32 %v1568_v37, 0.0  ;;  %v1740_v36 = vpop.permute.xlu1 %1739 }
 0x34c   : > { %v1597_v47 = vmax.f32 %v1587_v28, 0.0  ;;  %v1610_v50 = vpack.c.bf16 %v1596_v23, %v1594_v24 }
 0x34e   : > { %v1611_v52 = vpack.c.bf16 %v1597_v47, %v1595_v49 }
 0x34f   : > { %v1570_v27 = vpop.f32.mrf.mxu0 }
 0x350   : > { %v1571_v32 = vadd.f32 %v1570_v27, %v1533_v26 }
 0x351   : > { %v1589_v30 = vpop.f32.mrf.mxu1 }
 0x352   : > { %v1590_v38 = vadd.f32 %v1589_v30, %v1533_v26  ;;  %v1598_v42 = vmax.f32 %v1571_v32, 0.0  ;;  %v1735_v26 = vpop.permute.xlu0 %1734  ;;  %v1725_v30 = vpop.permute.xlu2 %1724 }
 0x354   : > { %v1599_v45 = vmax.f32 %v1590_v38, 0.0 }
 0x357   : > { %v1572_v35 = vpop.f32.mrf.mxu0 }
 0x358   : > { %v1573_v39 = vadd.f32 %v1572_v35, %v1538_v31 }
 0x359   : > { %v1591_v41 = vpop.f32.mrf.mxu1 }
 0x35a   : > { %v1600_v43 = vmax.f32 %v1573_v39, 0.0  ;;  %v1592_v34 = vadd.f32 %v1591_v41, %v1538_v31  ;;  %v1730_v44 = vpop.permute.xlu0 %1729 }
 0x35c   : > { %v1612_v29 = vpack.c.bf16 %v1600_v43, %v1598_v42  ;;  %v1601_v46 = vmax.f32 %v1592_v34, 0.0 }
 0x35e   : > { %v1613_v48 = vpack.c.bf16 %v1601_v46, %v1599_v45  ;;  %1652 = vmatpush.bf16.msra.mxu2 %v1612_v29 }
 0x360   : > { %1681 = vmatpush.bf16.msra.mxu3 %v1613_v48 }
 0x362   : > { %1653 = vmatpush.bf16.msra.mxu2 %v1610_v50  ;;  %v1720_v50 = vpop.permute.xlu2 %1719 }
 0x364   : > { %1682 = vmatpush.bf16.msra.mxu3 %v1611_v52 }
 0x365   : > { %3189 = vmatmul.msk.bf16.vlgmr.msra.gmra.mxu2 %vm960_vm0, %v3387_v51 }
 0x367   : > { %3193 = vmatmul.msk.bf16.vlgmr.msra.gmra.mxu3 %vm960_vm0, %v3387_v51 }
 0x375   : > { %3190 = vmatmul.msk.bf16.gmra.mxu2 %vm960_vm0, %v3388_v53 }
 0x377   : > { %3194 = vmatmul.msk.bf16.gmra.mxu3 %vm960_vm0, %v3388_v53 }
 0x385   : > { %3191 = vmatmul.msk.bf16.gmra.mxu2 %vm960_vm0, %v3389_v54 }
 0x387   : > { %3195 = vmatmul.msk.bf16.gmra.mxu3 %vm960_vm0, %v3389_v54 }
 0x395   : > { %3192 = vmatmul.msk.bf16.gmra.mxu2 %vm960_vm0, %v3390_v55 }
 0x397   : > { %3196 = vmatmul.msk.bf16.gmra.mxu3 %vm960_vm0, %v3390_v55  ;;  %v1715_v55 = vpop.permute.xlu1 %1714 }
 0x3e8   : > { %v1655_v56 = vpop.f32.mrf.mxu2 }
 0x3ea   : > { %v1684_v57 = vpop.f32.mrf.mxu3 }
 0x3f0   : > { %v1657_v58 = vpop.f32.mrf.mxu2 }
 0x3f2   : > { %v1686_v59 = vpop.f32.mrf.mxu3 }
 0x3f8   : > { %v1660_v60 = vpop.f32.mrf.mxu2 }
 0x3fa   : > { %v1689_v61 = vpop.f32.mrf.mxu3 }
 0x400   : > { %v1662_v62 = vpop.f32.mrf.mxu2 }
 0x401   : > { %v1663_v40 = vadd.f32 %v1662_v62, %v4039_v10  ;;  %v1658_v10 = vadd.f32 %v1657_v58, %v4031_v6  ;;  %v1685_v6 = vadd.f32 %v1684_v57, %v4029_v5 }
 0x402   : > { %v1691_v63 = vpop.f32.mrf.mxu3 }
 0x403   : > { %v1758_v29 = vadd.f32 %v1730_v44, %v1663_v40 }
 0x408   : > { %v1665_v2 = vpop.f32.mrf.mxu2 }
 0x409   : > { %v1666_v33 = vadd.f32 %v1665_v2, %v4043_v12  ;;  %v1692_v12 = vadd.f32 %v1691_v63, %v4041_v11  ;;  %v1687_v11 = vadd.f32 %v1686_v59, %v4033_v7  ;;  %v1753_v2 = vadd.f32 %v1715_v55, %v1685_v6 }
 0x40a   : > { %v1694_v0 = vpop.f32.mrf.mxu3 }
 0x40b   : > { %v1695_v41 = vadd.f32 %v1694_v0, %v4045_v13  ;;  %v1760_v34 = vadd.f32 %v1735_v26, %v1666_v33  ;;  %v1690_v13 = vadd.f32 %v1689_v61, %v4037_v9  ;;  %v1759_v51 = vadd.f32 %v1730_v44, %v1692_v12  ;;  %v1831_v12 = vpop.permute.xlu2 %1830 }
 0x40c   : > { %v1754_v9 = vadd.f32 %v1720_v50, %v1658_v10 }
 0x40d   : > { %v1761_v46 = vadd.f32 %v1735_v26, %v1695_v41  ;;  %v1776_v52 = vmax.f32 %v1760_v34, 0.0  ;;  %v1757_v58 = vadd.f32 %v1725_v30, %v1690_v13  ;;  %v1775_v7 = vmax.f32 %v1759_v51, 0.0 }
 0x40e   : > { %v1770_v0 = vmax.f32 %v1754_v9, 0.0 }
 0x40f   : > { %v1777_v61 = vmax.f32 %v1761_v46, 0.0 }
 0x410   : > { %v1667_v3 = vpop.f32.mrf.mxu2 }
 0x411   : > { %v1668_v31 = vadd.f32 %v1667_v3, %v4047_v14  ;;  %v1773_v3 = vmax.f32 %v1757_v58, 0.0 }
 0x412   : > { %v1696_v1 = vpop.f32.mrf.mxu3 }
 0x413   : > { %v1697_v37 = vadd.f32 %v1696_v1, %v4049_v15  ;;  %v1795_v57 = vpack.c.bf16 %v1775_v7, %v1773_v3 }
 0x415   : > { %v1763_v15 = vadd.f32 %v1740_v36, %v1697_v37 }
 0x417   : > { %v1779_v53 = vmax.f32 %v1763_v15, 0.0 }
 0x418   : > { %v1670_v22 = vpop.f32.mrf.mxu2 }
 0x419   : > { %v1671_v27 = vadd.f32 %v1670_v22, %v4051_v16  ;;  %v1762_v16 = vadd.f32 %v1740_v36, %v1668_v31  ;;  %v1797_v59 = vpack.c.bf16 %v1779_v53, %v1777_v61  ;;  %v3394_v31 = vld [vmem:[%s4396_s12 + $0x18] sm:$0xff] }
 0x41a   : > { %v1699_v25 = vpop.f32.mrf.mxu3 }
 0x41b   : > { %v1700_v32 = vadd.f32 %v1699_v25, %v4053_v17  ;;  %v1764_v38 = vadd.f32 %v1745_v21, %v1671_v27  ;;  %v1661_v17 = vadd.f32 %v1660_v60, %v4035_v8  ;;  %v1778_v24 = vmax.f32 %v1762_v16, 0.0  ;;  %v3391_v25 = vld [vmem:[%s4396_s12] sm:$0xff]  ;;  %v3392_v27 = vld [vmem:[%s4396_s12 + $0x8] sm:$0xff] }
 0x41c   : > { %v1656_v8 = vadd.f32 %v1655_v56, %v4027_v4  ;;  %v1774_v60 = vmax.f32 %v1758_v29, 0.0  ;;  %v1755_v4 = vadd.f32 %v1720_v50, %v1687_v11 }
 0x41d   : > { %v1765_v42 = vadd.f32 %v1745_v21, %v1700_v32  ;;  %v1780_v23 = vmax.f32 %v1764_v38, 0.0  ;;  %v1756_v49 = vadd.f32 %v1725_v30, %v1661_v17  ;;  %v1796_v62 = vpack.c.bf16 %v1778_v24, %v1776_v52  ;;  %v3393_v30 = vld [vmem:[%s4396_s12 + $0x10] sm:$0xff]  ;;  %v1826_v24 = vpop.permute.xlu2 %1825 }
 0x41e   : > { %v1752_v63 = vadd.f32 %v1715_v55, %v1656_v8  ;;  %v1771_v5 = vmax.f32 %v1755_v4, 0.0  ;;  %v1769_v21 = vmax.f32 %v1753_v2, 0.0 }
 0x41f   : > { %v1781_v47 = vmax.f32 %v1765_v42, 0.0  ;;  %v1772_v56 = vmax.f32 %v1756_v49, 0.0 }
 0x420   : > { %v1672_v35 = vpop.f32.mrf.mxu2  ;;  %v1793_v26 = vpack.c.bf16 %v1771_v5, %v1769_v21 }
 0x421   : > { %v1673_v39 = vadd.f32 %v1672_v35, %v4055_v18  ;;  %v1794_v1 = vpack.c.bf16 %v1774_v60, %v1772_v56 }
 0x422   : > { %v1701_v28 = vpop.f32.mrf.mxu3 }
 0x423   : > { %v1766_v43 = vadd.f32 %v1750_v20, %v1673_v39  ;;  %v1702_v14 = vadd.f32 %v1701_v28, %v4057_v19 }
 0x425   : > { %v1782_v45 = vmax.f32 %v1766_v43, 0.0  ;;  %v1767_v18 = vadd.f32 %v1750_v20, %v1702_v14  ;;  %v1768_v20 = vmax.f32 %v1752_v63, 0.0  ;;  %v1846_v43 = vpop.permute.xlu1 %1845  ;;  %v1841_v14 = vpop.permute.xlu0 %1840 }
 0x427   : > { %v1798_v48 = vpack.c.bf16 %v1782_v45, %v1780_v23  ;;  %v1783_v19 = vmax.f32 %v1767_v18, 0.0  ;;  %v1792_v22 = vpack.c.bf16 %v1770_v0, %v1768_v20 }
 0x429   : > { %v1799_v54 = vpack.c.bf16 %v1783_v19, %v1781_v47  ;;  %1884 = vmatpush.bf16.msra.mxu0 %v1798_v48 }
 0x42b   : > { %1913 = vmatpush.bf16.msra.mxu1 %v1799_v54 }
 0x42d   : > { %1885 = vmatpush.bf16.msra.mxu0 %v1796_v62  ;;  %v1821_v44 = vpop.permute.xlu1 %1820  ;;  %v1836_v15 = vpop.permute.xlu0 %1835 }
 0x42f   : > { %1914 = vmatpush.bf16.msra.mxu1 %v1797_v59 }
 0x431   : > { %1886 = vmatpush.bf16.msra.mxu0 %v1794_v1 }
 0x433   : > { %1915 = vmatpush.bf16.msra.mxu1 %v1795_v57 }
 0x435   : > { %1887 = vmatpush.bf16.msra.mxu0 %v1792_v22  ;;  %v1816_v6 = vpop.permute.xlu1 %1815  ;;  %v1811_v62 = vpop.permute.xlu0 %1810 }
 0x437   : > { %1916 = vmatpush.bf16.msra.mxu1 %v1793_v26 }
 0x438   : > { %3213 = vmatmul.msk.bf16.vlgmr.msra.gmra.mxu0 %vm1247_vm1, %v3391_v25 }
 0x43a   : > { %3217 = vmatmul.msk.bf16.vlgmr.msra.gmra.mxu1 %vm1247_vm1, %v3391_v25 }
 0x448   : > { %3214 = vmatmul.msk.bf16.gmra.mxu0 %vm1247_vm1, %v3392_v27 }
 0x44a   : > { %3218 = vmatmul.msk.bf16.gmra.mxu1 %vm1247_vm1, %v3392_v27 }
 0x458   : > { %3215 = vmatmul.msk.bf16.gmra.mxu0 %vm1247_vm1, %v3393_v30 }
 0x45a   : > { %3219 = vmatmul.msk.bf16.gmra.mxu1 %vm1247_vm1, %v3393_v30 }
 0x468   : > { %3216 = vmatmul.msk.bf16.gmra.mxu0 %vm1247_vm1, %v3394_v31 }
 0x46a   : > { %3220 = vmatmul.msk.bf16.gmra.mxu1 %vm1247_vm1, %v3394_v31  ;;  %v3395_v31 = vld [vmem:[%s4398_s14] sm:$0xff] }
 0x4b5   : > { %v1889_v32 = vpop.f32.mrf.mxu0 }
 0x4b6   : > { %v1890_v59 = vadd.f32 %v1889_v32, %v1811_v62 }
 0x4b7   : > { %v1918_v33 = vpop.f32.mrf.mxu1 }
 0x4b8   : > { %v1919_v20 = vadd.f32 %v1918_v33, %v1811_v62  ;;  %v1938_v22 = vmax.f32 %v1890_v59, 0.0  ;;  %v3396_v33 = vld [vmem:[%s4398_s14 + $0x8] sm:$0xff] }
 0x4ba   : > { %v1939_v27 = vmax.f32 %v1919_v20, 0.0 }
 0x4bd   : > { %v1891_v35 = vpop.f32.mrf.mxu0 }
 0x4be   : > { %v1892_v61 = vadd.f32 %v1891_v35, %v1816_v6  ;;  %v3397_v35 = vld [vmem:[%s4398_s14 + $0x10] sm:$0xff] }
 0x4bf   : > { %v1920_v36 = vpop.f32.mrf.mxu1 }
 0x4c0   : > { %v1921_v2 = vadd.f32 %v1920_v36, %v1816_v6  ;;  %v1940_v5 = vmax.f32 %v1892_v61, 0.0  ;;  %v3398_v36 = vld [vmem:[%s4398_s14 + $0x18] sm:$0xff] }
 0x4c2   : > { %v1941_v25 = vmax.f32 %v1921_v2, 0.0  ;;  %v1970_v30 = vpack.c.bf16 %v1940_v5, %v1938_v22 }
 0x4c4   : > { %v1971_v32 = vpack.c.bf16 %v1941_v25, %v1939_v27 }
 0x4c5   : > { %v1894_v37 = vpop.f32.mrf.mxu0 }
 0x4c6   : > { %v1895_v54 = vadd.f32 %v1894_v37, %v1821_v44 }
 0x4c7   : > { %v1923_v38 = vpop.f32.mrf.mxu1 }
 0x4c8   : > { %v1924_v63 = vadd.f32 %v1923_v38, %v1821_v44  ;;  %v1942_v0 = vmax.f32 %v1895_v54, 0.0  ;;  %v2181_v44 = vpop.permute.xlu2 %2180 }
 0x4ca   : > { %v1943_v57 = vmax.f32 %v1924_v63, 0.0 }
 0x4cd   : > { %v1896_v39 = vpop.f32.mrf.mxu0 }
 0x4ce   : > { %v1897_v11 = vadd.f32 %v1896_v39, %v1826_v24 }
 0x4cf   : > { %v1925_v40 = vpop.f32.mrf.mxu1 }
 0x4d0   : > { %v1926_v9 = vadd.f32 %v1925_v40, %v1826_v24  ;;  %v1944_v4 = vmax.f32 %v1897_v11, 0.0 }
 0x4d2   : > { %v1945_v3 = vmax.f32 %v1926_v9, 0.0  ;;  %v1972_v21 = vpack.c.bf16 %v1944_v4, %v1942_v0 }
 0x4d4   : > { %v1973_v26 = vpack.c.bf16 %v1945_v3, %v1943_v57 }
 0x4d5   : > { %v1899_v41 = vpop.f32.mrf.mxu0 }
 0x4d6   : > { %v1900_v29 = vadd.f32 %v1899_v41, %v1831_v12 }
 0x4d7   : > { %v1928_v28 = vpop.f32.mrf.mxu1 }
 0x4d8   : > { %v1929_v49 = vadd.f32 %v1928_v28, %v1831_v12  ;;  %v1946_v55 = vmax.f32 %v1900_v29, 0.0 }
 0x4da   : > { %v1947_v56 = vmax.f32 %v1929_v49, 0.0 }
 0x4dd   : > { %v1901_v16 = vpop.f32.mrf.mxu0 }
 0x4de   : > { %v1902_v18 = vadd.f32 %v1901_v16, %v1836_v15 }
 0x4df   : > { %v1930_v42 = vpop.f32.mrf.mxu1 }
 0x4e0   : > { %v1931_v47 = vadd.f32 %v1930_v42, %v1836_v15  ;;  %v1948_v50 = vmax.f32 %v1902_v18, 0.0 }
 0x4e2   : > { %v1949_v58 = vmax.f32 %v1931_v47, 0.0  ;;  %v1974_v7 = vpack.c.bf16 %v1948_v50, %v1946_v55 }
 0x4e4   : > { %v1975_v1 = vpack.c.bf16 %v1949_v58, %v1947_v56 }
 0x4e5   : > { %v1904_v17 = vpop.f32.mrf.mxu0 }
 0x4e6   : > { %v1905_v23 = vadd.f32 %v1904_v17, %v1841_v14 }
 0x4e7   : > { %v1933_v34 = vpop.f32.mrf.mxu1 }
 0x4e8   : > { %v1934_v10 = vadd.f32 %v1933_v34, %v1841_v14  ;;  %v1950_v48 = vmax.f32 %v1905_v23, 0.0  ;;  %v2186_v34 = vpop.permute.xlu0 %2185  ;;  %v2171_v23 = vpop.permute.xlu1 %2170 }
 0x4ea   : > { %v1951_v51 = vmax.f32 %v1934_v10, 0.0  ;;  %v2176_v10 = vpop.permute.xlu2 %2175 }
 0x4ed   : > { %v1906_v45 = vpop.f32.mrf.mxu0 }
 0x4ee   : > { %v1907_v13 = vadd.f32 %v1906_v45, %v1846_v43 }
 0x4ef   : > { %v1935_v46 = vpop.f32.mrf.mxu1 }
 0x4f0   : > { %v1952_v19 = vmax.f32 %v1907_v13, 0.0  ;;  %v1936_v8 = vadd.f32 %v1935_v46, %v1846_v43  ;;  %v2161_v18 = vpop.permute.xlu0 %2160 }
 0x4f2   : > { %v1976_v52 = vpack.c.bf16 %v1952_v19, %v1950_v48  ;;  %v1953_v53 = vmax.f32 %v1936_v8, 0.0  ;;  %v2166_v8 = vpop.permute.xlu1 %2165 }
 0x4f4   : > { %v1977_v60 = vpack.c.bf16 %v1953_v53, %v1951_v51  ;;  %2046 = vmatpush.bf16.msrb.mxu2 %v1976_v52 }
 0x4f6   : > { %2095 = vmatpush.bf16.msrb.mxu3 %v1977_v60 }
 0x4f8   : > { %2047 = vmatpush.bf16.msrb.mxu2 %v1974_v7  ;;  %v2156_v60 = vpop.permute.xlu0 %2155  ;;  %v2151_v7 = vpop.permute.xlu2 %2150 }
 0x4fa   : > { %2096 = vmatpush.bf16.msrb.mxu3 %v1975_v1 }
 0x4fc   : > { %2048 = vmatpush.bf16.msrb.mxu2 %v1972_v21 }
 0x4fe   : > { %2097 = vmatpush.bf16.msrb.mxu3 %v1973_v26 }
 0x500   : > { %2049 = vmatpush.bf16.msrb.mxu2 %v1970_v30 }
 0x502   : > { %2098 = vmatpush.bf16.msrb.mxu3 %v1971_v32 }
 0x503   : > { %3253 = vmatmul.msk.bf16.vlgmr.msrb.gmra.mxu2 %vm1247_vm1, %v3395_v31 }
 0x505   : > { %3261 = vmatmul.msk.bf16.vlgmr.msrb.gmra.mxu3 %vm1247_vm1, %v3395_v31 }
 0x513   : > { %3254 = vmatmul.msk.bf16.gmra.mxu2 %vm1247_vm1, %v3396_v33 }
 0x515   : > { %3262 = vmatmul.msk.bf16.gmra.mxu3 %vm1247_vm1, %v3396_v33 }
 0x523   : > { %3255 = vmatmul.msk.bf16.gmra.mxu2 %vm1247_vm1, %v3397_v35 }
 0x525   : > { %3263 = vmatmul.msk.bf16.gmra.mxu3 %vm1247_vm1, %v3397_v35 }
 0x533   : > { %3256 = vmatmul.msk.bf16.gmra.mxu2 %vm1247_vm1, %v3398_v36 }
 0x535   : > { %3264 = vmatmul.msk.bf16.gmra.mxu3 %vm1247_vm1, %v3398_v36  ;;  %v3403_v36 = vld [vmem:[%s4401_s17] sm:$0xff] }
 0x586   : > { %v2051_v37 = vpop.f32.mrf.mxu2 }
 0x587   : > { %v2188_v1 = vadd.f32 %v2151_v7, %v2051_v37 }
 0x588   : > { %v2100_v38 = vpop.f32.mrf.mxu3 }
 0x589   : > { %v2189_v22 = vadd.f32 %v2151_v7, %v2100_v38  ;;  %v2204_v30 = vmax.f32 %v2188_v1, 0.0  ;;  %v3404_v38 = vld [vmem:[%s4401_s17 + $0x8] sm:$0xff]  ;;  %v3410_v7 = vld [vmem:[%s4403_s19 + $0x18] sm:$0xff] }
 0x58b   : > { %v2205_v33 = vmax.f32 %v2189_v22, 0.0 }
 0x58e   : > { %v2053_v39 = vpop.f32.mrf.mxu2 }
 0x58f   : > { %v2190_v56 = vadd.f32 %v2156_v60, %v2053_v39  ;;  %v3399_v39 = vld [vmem:[%s4398_s14 + $0x20] sm:$0xff] }
 0x590   : > { %v2102_v40 = vpop.f32.mrf.mxu3  ;;  %3265 = vmatmul.msk.bf16.gmra.mxu3 %vm1247_vm1, %v3399_v39  ;;  %3257 = vmatmul.msk.bf16.gmra.mxu2 %vm1247_vm1, %v3399_v39 }
 0x591   : > { %v2191_v20 = vadd.f32 %v2156_v60, %v2102_v40  ;;  %v2206_v25 = vmax.f32 %v2190_v56, 0.0  ;;  %v896_v40 = vld [vmem:[%s804_s4 + $0x20] sm:$0xff] }
 0x593   : > { %v2207_v31 = vmax.f32 %v2191_v20, 0.0  ;;  %v2228_v35 = vpack.c.bf16 %v2206_v25, %v2204_v30 }
 0x595   : > { %v2229_v37 = vpack.c.bf16 %v2207_v31, %v2205_v33 }
 0x596   : > { %v2056_v41 = vpop.f32.mrf.mxu2 }
 0x597   : > { %v2192_v58 = vadd.f32 %v2161_v18, %v2056_v41  ;;  %v898_v41 = vld [vmem:[%s804_s4 + $0x30] sm:$0xff] }
 0x598   : > { %v2105_v28 = vpop.f32.mrf.mxu3 }
 0x599   : > { %v2193_v59 = vadd.f32 %v2161_v18, %v2105_v28  ;;  %v2208_v5 = vmax.f32 %v2192_v58, 0.0  ;;  %v2400_v28 = vpack.c.bf16 %v898_v41, %v896_v40  ;;  %v4157_v18 = vpop.permute.xlu2 %2537 }
 0x59b   : > { %v2209_v26 = vmax.f32 %v2193_v59, 0.0 }
 0x59e   : > { %v2058_v16 = vpop.f32.mrf.mxu2 }
 0x59f   : > { %v2194_v52 = vadd.f32 %v2166_v8, %v2058_v16  ;;  %v897_v16 = vld [vmem:[%s804_s4 + $0x28] sm:$0xff] }
 0x5a0   : > { %v2107_v42 = vpop.f32.mrf.mxu3 }
 0x5a1   : > { %v2195_v61 = vadd.f32 %v2166_v8, %v2107_v42  ;;  %v2210_v2 = vmax.f32 %v2194_v52, 0.0  ;;  %v899_v42 = vld [vmem:[%s804_s4 + $0x38] sm:$0xff]  ;;  %v3407_v8 = vld [vmem:[%s4403_s19] sm:$0xff] }
 0x5a3   : > { %v2211_v57 = vmax.f32 %v2195_v61, 0.0  ;;  %v2230_v27 = vpack.c.bf16 %v2210_v2, %v2208_v5  ;;  %v3409_v61 = vld [vmem:[%s4403_s19 + $0x10] sm:$0xff] }
 0x5a5   : > { %v2231_v32 = vpack.c.bf16 %v2211_v57, %v2209_v26 }
 0x5a6   : > { %v2061_v43 = vpop.f32.mrf.mxu2 }
 0x5a7   : > { %v2196_v48 = vadd.f32 %v2171_v23, %v2061_v43  ;;  %v892_v43 = vld [vmem:[%s804_s4] sm:$0xff] }
 0x5a8   : > { %v2110_v14 = vpop.f32.mrf.mxu3 }
 0x5a9   : > { %v2197_v53 = vadd.f32 %v2171_v23, %v2110_v14  ;;  %v2212_v62 = vmax.f32 %v2196_v48, 0.0  ;;  %v2401_v14 = vpack.c.bf16 %v899_v42, %v897_v16  ;;  %v3405_v23 = vld [vmem:[%s4401_s17 + $0x10] sm:$0xff] }
 0x5ab   : > { %v2213_v0 = vmax.f32 %v2197_v53, 0.0 }
 0x5ae   : > { %v2063_v17 = vpop.f32.mrf.mxu2 }
 0x5af   : > { %v2198_v46 = vadd.f32 %v2176_v10, %v2063_v17  ;;  %v894_v17 = vld [vmem:[%s804_s4 + $0x10] sm:$0xff] }
 0x5b0   : > { %v2112_v12 = vpop.f32.mrf.mxu3 }
 0x5b1   : > { %v2199_v11 = vadd.f32 %v2176_v10, %v2112_v12  ;;  %v2214_v54 = vmax.f32 %v2198_v46, 0.0  ;;  %v893_v12 = vld [vmem:[%s804_s4 + $0x8] sm:$0xff]  ;;  %v3406_v46 = vld [vmem:[%s4401_s17 + $0x18] sm:$0xff] }
 0x5b2   : > { %v3400_v10 = vld [vmem:[%s4398_s14 + $0x28] sm:$0xff] }
 0x5b3   : > { %v2215_v63 = vmax.f32 %v2199_v11, 0.0  ;;  %v2232_v3 = vpack.c.bf16 %v2214_v54, %v2212_v62  ;;  %3266 = vmatmul.msk.bf16.gmra.mxu3 %vm1247_vm1, %v3400_v10  ;;  %3258 = vmatmul.msk.bf16.gmra.mxu2 %vm1247_vm1, %v3400_v10  ;;  %v3408_v54 = vld [vmem:[%s4403_s19 + $0x8] sm:$0xff] }
 0x5b5   : > { %v2233_v21 = vpack.c.bf16 %v2215_v63, %v2213_v0 }
 0x5b6   : > { %v2066_v15 = vpop.f32.mrf.mxu2 }
 0x5b7   : > { %v2200_v13 = vadd.f32 %v2181_v44, %v2066_v15 }
 0x5b8   : > { %v2115_v45 = vpop.f32.mrf.mxu3 }
 0x5b9   : > { %v2201_v24 = vadd.f32 %v2181_v44, %v2115_v45  ;;  %v2216_v49 = vmax.f32 %v2200_v13, 0.0  ;;  %v2398_v44 = vpack.c.bf16 %v894_v17, %v892_v43  ;;  %v4154_v45 = vpop.permute.xlu1 %2532 }
 0x5bb   : > { %v2217_v6 = vmax.f32 %v2201_v24, 0.0  ;;  %v3401_v24 = vld [vmem:[%s4398_s14 + $0x30] sm:$0xff] }
 0x5be   : > { %v2068_v29 = vpop.f32.mrf.mxu2 }
 0x5bf   : > { %v2202_v47 = vadd.f32 %v2186_v34, %v2068_v29  ;;  %v4167_v29 = vpop.permute.xlu2 %2512 }
 0x5c0   : > { %v2117_v19 = vpop.f32.mrf.mxu3 }
 0x5c1   : > { %v2218_v50 = vmax.f32 %v2202_v47, 0.0  ;;  %v2203_v51 = vadd.f32 %v2186_v34, %v2117_v19  ;;  %v895_v34 = vld [vmem:[%s804_s4 + $0x18] sm:$0xff]  ;;  %v4165_v13 = vpop.permute.xlu1 %2527  ;;  %v4183_v19 = vpop.permute.xlu0 %2522  ;;  %s881_s4 = scalar_lea.vmem %s4410_s26, %s3064_s3 }
 0x5c2   : > { %v2399_v15 = vpack.c.bf16 %v895_v34, %v893_v12 }
 0x5c3   : > { %v2234_v9 = vpack.c.bf16 %v2218_v50, %v2216_v49  ;;  %v2219_v55 = vmax.f32 %v2203_v51, 0.0  ;;  %3267 = vmatmul.msk.bf16.gmra.mxu3 %vm1247_vm1, %v3401_v24  ;;  %3259 = vmatmul.msk.bf16.gmra.mxu2 %vm1247_vm1, %v3401_v24  ;;  %v3402_v50 = vld [vmem:[%s4398_s14 + $0x38] sm:$0xff] }
 0x5c5   : > { %v2235_v4 = vpack.c.bf16 %v2219_v55, %v2217_v6  ;;  %2320 = vmatpush.bf16.msrb.mxu0 %v2234_v9 }
 0x5c7   : > { %2349 = vmatpush.bf16.msrb.mxu1 %v2235_v4  ;;  %v4181_v48 = vpop.permute.xlu2 %2507 }
 0x5c9   : > { %2321 = vmatpush.bf16.msrb.mxu0 %v2232_v3  ;;  %v4177_v47 = vpop.permute.xlu1 %2502  ;;  %v4199_v51 = vpop.permute.xlu0 %2517 }
 0x5cb   : > { %2350 = vmatpush.bf16.msrb.mxu1 %v2233_v21 }
 0x5cd   : > { %2322 = vmatpush.bf16.msrb.mxu0 %v2230_v27 }
 0x5cf   : > { %2351 = vmatpush.bf16.msrb.mxu1 %v2231_v32  ;;  %v4190_v49 = vpop.permute.xlu2 %2618 }
 0x5d1   : > { %2323 = vmatpush.bf16.msrb.mxu0 %v2228_v35  ;;  %v4188_v11 = vpop.permute.xlu1 %2633  ;;  %v4208_v6 = vpop.permute.xlu0 %2628 }
 0x5d3   : > { %2352 = vmatpush.bf16.msrb.mxu1 %v2229_v37  ;;  %3268 = vmatmul.msk.bf16.gmra.mxu3 %vm1247_vm1, %v3402_v50 }
 0x5d4   : > { %3285 = vmatmul.msk.bf16.vlgmr.msrb.gmra.mxu0 %vm1247_vm1, %v3403_v36  ;;  %3260 = vmatmul.msk.bf16.gmra.mxu2 %vm1247_vm1, %v3402_v50 }
 0x5d5   : > { %2440 = vmatpush.bf16.msra.mxu0 %v2400_v28 }
 0x5d6   : > { %3289 = vmatmul.msk.bf16.vlgmr.msrb.gmra.mxu1 %vm1247_vm1, %v3403_v36 }
 0x5d7   : > { %2469 = vmatpush.bf16.msra.mxu1 %v2401_v14  ;;  %v4203_v53 = vpop.permute.xlu2 %2613 }
 0x5d9   : > { %2441 = vmatpush.bf16.msra.mxu0 %v2398_v44  ;;  %v4201_v52 = vpop.permute.xlu1 %2608  ;;  %v4216_v58 = vpop.permute.xlu0 %2623 }
 0x5db   : > { %2470 = vmatpush.bf16.msra.mxu1 %v2399_v15 }
 0x5df   : > { %v4214_v55 = vpop.permute.xlu2 %2798 }
 0x5e1   : > { %v4211_v9 = vpop.permute.xlu1 %2603  ;;  %v4227_v63 = vpop.permute.xlu0 %2598 }
 0x5e4   : > { %3286 = vmatmul.msk.bf16.gmra.mxu0 %vm1247_vm1, %v3404_v38 }
 0x5e6   : > { %3290 = vmatmul.msk.bf16.gmra.mxu1 %vm1247_vm1, %v3404_v38 }
 0x5e7   : > { %v4223_v62 = vpop.permute.xlu2 %2793 }
 0x5e9   : > { %v4218_v60 = vpop.permute.xlu1 %2788  ;;  %v4236_v59 = vpop.permute.xlu0 %2803 }
 0x5ef   : > { %v4231_v56 = vpop.permute.xlu2 %2768 }
 0x5f0   : > { %4453 = vst [vmem:[#allocation7_spill] sm:$0xff] %v4231_v56 }
 0x5f1   : > { %v4229_v4 = vpop.permute.xlu1 %2783  ;;  %v4242_v3 = vpop.permute.xlu0 %2778 }
 0x5f4   : > { %3287 = vmatmul.msk.bf16.gmra.mxu0 %vm1247_vm1, %v3405_v23 }
 0x5f6   : > { %3291 = vmatmul.msk.bf16.gmra.mxu1 %vm1247_vm1, %v3405_v23 }
 0x5f7   : > { %v4239_v0 = vpop.permute.xlu2 %2281 }
 0x5f9   : > { %v2277_v2 = vpop.permute.xlu1 %2276  ;;  %v4244_v21 = vpop.permute.xlu0 %2773 }
 0x5fa   : > { %4454 = vst [vmem:[#allocation8_spill] sm:$0xff] %v4244_v21 }
 0x5ff   : > { %v2257_v20 = vpop.permute.xlu2 %2256 }
 0x601   : > { %v2272_v1 = vpop.permute.xlu1 %2271  ;;  %v2267_v40 = vpop.permute.xlu0 %2266 }
 0x604   : > { %3288 = vmatmul.msk.bf16.gmra.mxu0 %vm1247_vm1, %v3406_v46 }
 0x606   : > { %3292 = vmatmul.msk.bf16.gmra.mxu1 %vm1247_vm1, %v3406_v46 }
 0x607   : > { %v2252_v26 = vpop.permute.xlu2 %2251 }
 0x609   : > { %v2247_v22 = vpop.permute.xlu1 %2246  ;;  %v2262_v43 = vpop.permute.xlu0 %2261 }
 0x614   : > { %3309 = vmatmul.msk.bf16.vlgmr.msra.gmra.mxu0 %vm960_vm0, %v3407_v8 }
 0x616   : > { %3313 = vmatmul.msk.bf16.vlgmr.msra.gmra.mxu1 %vm960_vm0, %v3407_v8 }
 0x624   : > { %3310 = vmatmul.msk.bf16.gmra.mxu0 %vm960_vm0, %v3408_v54 }
 0x626   : > { %3314 = vmatmul.msk.bf16.gmra.mxu1 %vm960_vm0, %v3408_v54 }
 0x634   : > { %3311 = vmatmul.msk.bf16.gmra.mxu0 %vm960_vm0, %v3409_v61 }
 0x636   : > { %3315 = vmatmul.msk.bf16.gmra.mxu1 %vm960_vm0, %v3409_v61 }
 0x644   : > { %3312 = vmatmul.msk.bf16.gmra.mxu0 %vm960_vm0, %v3410_v7 }
 0x646   : > { %3316 = vmatmul.msk.bf16.gmra.mxu1 %vm960_vm0, %v3410_v7 }
 0x651   : > { %v2325_v5 = vpop.f32.mrf.mxu0 }
 0x652   : > { %v2326_v25 = vadd.f32 %v2325_v5, %v2247_v22 }
 0x653   : > { %v2354_v57 = vpop.f32.mrf.mxu1 }
 0x654   : > { %v2355_v30 = vadd.f32 %v2354_v57, %v2247_v22  ;;  %v2374_v33 = vmax.f32 %v2326_v25, 0.0 }
 0x656   : > { %v2375_v37 = vmax.f32 %v2355_v30, 0.0 }
 0x659   : > { %v2327_v27 = vpop.f32.mrf.mxu0 }
 0x65a   : > { %v2328_v31 = vadd.f32 %v2327_v27, %v2252_v26 }
 0x65b   : > { %v2356_v32 = vpop.f32.mrf.mxu1 }
 0x65c   : > { %v2376_v35 = vmax.f32 %v2328_v31, 0.0  ;;  %v2357_v36 = vadd.f32 %v2356_v32, %v2252_v26 }
 0x65e   : > { %v4246_v38 = vpack.c.bf16 %v2376_v35, %v2374_v33  ;;  %v2377_v39 = vmax.f32 %v2357_v36, 0.0  ;;  %v2071_v36 = vpop.f32.mrf.mxu2 }
 0x660   : > { %4455 = vst [vmem:[#allocation9_spill] sm:$0xff] %v4246_v38  ;;  %v4248_v41 = vpack.c.bf16 %v2377_v39, %v2375_v37  ;;  %v2120_v37 = vpop.f32.mrf.mxu3 }
 0x661   : > { %v2330_v28 = vpop.f32.mrf.mxu0 }
 0x662   : > { %4456 = vst [vmem:[#allocation10_spill] sm:$0xff] %v4248_v41  ;;  %v2331_v42 = vadd.f32 %v2330_v28, %v2257_v20 }
 0x663   : > { %v2359_v16 = vpop.f32.mrf.mxu1 }
 0x664   : > { %v2360_v17 = vadd.f32 %v2359_v16, %v2257_v20  ;;  %v2378_v44 = vmax.f32 %v2331_v42, 0.0 }
 0x666   : > { %v2379_v10 = vmax.f32 %v2360_v17, 0.0  ;;  %v2073_v17 = vpop.f32.mrf.mxu2 }
 0x669   : > { %v2332_v14 = vpop.f32.mrf.mxu0 }
 0x66a   : > { %v2333_v12 = vadd.f32 %v2332_v14, %v2262_v43 }
 0x66b   : > { %v2361_v34 = vpop.f32.mrf.mxu1 }
 0x66c   : > { %v2380_v15 = vmax.f32 %v2333_v12, 0.0  ;;  %v2362_v23 = vadd.f32 %v2361_v34, %v2262_v43 }
 0x66e   : > { %v4250_v46 = vpack.c.bf16 %v2380_v15, %v2378_v44  ;;  %v2381_v24 = vmax.f32 %v2362_v23, 0.0  ;;  %v2122_v15 = vpop.f32.mrf.mxu3 }
 0x670   : > { %4457 = vst [vmem:[#allocation11_spill] sm:$0xff] %v4250_v46  ;;  %v4252_v8 = vpack.c.bf16 %v2381_v24, %v2379_v10 }
 0x671   : > { %v2335_v50 = vpop.f32.mrf.mxu0 }
 0x672   : > { %4458 = vst [vmem:[#allocation12_spill] sm:$0xff] %v4252_v8  ;;  %v2336_v61 = vadd.f32 %v2335_v50, %v2267_v40 }
 0x673   : > { %v2364_v54 = vpop.f32.mrf.mxu1 }
 0x674   : > { %v2365_v5 = vadd.f32 %v2364_v54, %v2267_v40  ;;  %v2382_v25 = vmax.f32 %v2336_v61, 0.0  ;;  %v2076_v54 = vpop.f32.mrf.mxu2 }
 0x676   : > { %v2383_v27 = vmax.f32 %v2365_v5, 0.0  ;;  %v2125_v61 = vpop.f32.mrf.mxu3 }
 0x679   : > { %v2337_v7 = vpop.f32.mrf.mxu0 }
 0x67a   : > { %v2338_v57 = vadd.f32 %v2337_v7, %v2272_v1 }
 0x67b   : > { %v2366_v22 = vpop.f32.mrf.mxu1 }
 0x67c   : > { %v2384_v20 = vmax.f32 %v2338_v57, 0.0  ;;  %v2367_v26 = vadd.f32 %v2366_v22, %v2272_v1 }
 0x67e   : > { %v4254_v30 = vpack.c.bf16 %v2384_v20, %v2382_v25  ;;  %v2385_v31 = vmax.f32 %v2367_v26, 0.0  ;;  %v2127_v22 = vpop.f32.mrf.mxu3 }
 0x680   : > { %4459 = vst [vmem:[#allocation13_spill] sm:$0xff] %v4254_v30  ;;  %v4256_v32 = vpack.c.bf16 %v2385_v31, %v2383_v27 }
 0x681   : > { %v2340_v33 = vpop.f32.mrf.mxu0 }
 0x682   : > { %4460 = vst [vmem:[#allocation14_spill] sm:$0xff] %v4256_v32  ;;  %v2341_v39 = vadd.f32 %v2340_v33, %v2277_v2 }
 0x683   : > { %v2369_v35 = vpop.f32.mrf.mxu1 }
 0x684   : > { %v2370_v16 = vadd.f32 %v2369_v35, %v2277_v2  ;;  %v2386_v43 = vmax.f32 %v2341_v39, 0.0 }
 0x686   : > { %v2387_v12 = vmax.f32 %v2370_v16, 0.0  ;;  %v2130_v31 = vpop.f32.mrf.mxu3 }
 0x689   : > { %v2342_v28 = vpop.f32.mrf.mxu0 }
 0x68a   : > { %v2343_v40 = vadd.f32 %v2342_v28, %v4239_v0 }
 0x68b   : > { %v2371_v42 = vpop.f32.mrf.mxu1 }
 0x68c   : > { %v2388_v14 = vmax.f32 %v2343_v40, 0.0  ;;  %v2372_v1 = vadd.f32 %v2371_v42, %v4239_v0  ;;  %v2078_v0 = vpop.f32.mrf.mxu2 }
 0x68e   : > { %v4260_v34 = vpack.c.bf16 %v2388_v14, %v2386_v43  ;;  %v2389_v44 = vmax.f32 %v2372_v1, 0.0 }
 0x690   : > { %4461 = vst [vmem:[#allocation15_spill] sm:$0xff] %v4260_v34  ;;  %v4262_v23 = vpack.c.bf16 %v2389_v44, %v2387_v12 }
 0x691   : > { %v2443_v10 = vpop.f32.mrf.mxu0 }
 0x692   : > { %4462 = vst [vmem:[#allocation16_spill] sm:$0xff] %v4262_v23  ;;  %v4264_v24 = vadd.f32 %v2443_v10, %v2071_v36  ;;  %v2132_v36 = vpop.f32.mrf.mxu3 }
 0x693   : > { %v2472_v50 = vpop.f32.mrf.mxu1 }
 0x694   : > { %v4266_v2 = vadd.f32 %v2472_v50, %v2120_v37  ;;  %v2081_v27 = vpop.f32.mrf.mxu2 }
 0x699   : > { %v2445_v7 = vpop.f32.mrf.mxu0 }
 0x69a   : > { %v2135_v40 = vpop.f32.mrf.mxu3 }
 0x69b   : > { %v2474_v5 = vpop.f32.mrf.mxu1 }
 0x69c   : > { %v2083_v39 = vpop.f32.mrf.mxu2 }
 0x6a1   : > { %v2448_v57 = vpop.f32.mrf.mxu0 }
 0x6a2   : > { %v2137_v30 = vpop.f32.mrf.mxu3 }
 0x6a3   : > { %v2477_v25 = vpop.f32.mrf.mxu1 }
 0x6a4   : > { %v2086_v37 = vpop.f32.mrf.mxu2 }
 0x6a9   : > { %v2450_v20 = vpop.f32.mrf.mxu0 }
 0x6aa   : > { %v2451_v46 = vadd.f32 %v2450_v20, %v2078_v0  ;;  %v2446_v20 = vadd.f32 %v2445_v7, %v2073_v17 }
 0x6ab   : > { %v2479_v26 = vpop.f32.mrf.mxu1 }
 0x6ac   : > { %v2088_v10 = vpop.f32.mrf.mxu2 }
 0x6b1   : > { %v2453_v33 = vpop.f32.mrf.mxu0 }
 0x6b2   : > { %v2454_v44 = vadd.f32 %v2453_v33, %v2081_v27 }
 0x6b3   : > { %v2482_v35 = vpop.f32.mrf.mxu1 }
 0x6b4   : > { %v2483_v32 = vadd.f32 %v2482_v35, %v2130_v31  ;;  %v2548_v27 = vadd.f32 %v4183_v19, %v2454_v44  ;;  %v2478_v31 = vadd.f32 %v2477_v25, %v2125_v61  ;;  %v2546_v35 = vadd.f32 %v4199_v51, %v2451_v46 }
 0x6b5   : > { %v2541_v61 = vadd.f32 %v4177_v47, %v4266_v2  ;;  %v3413_v2 = vld [vmem:[%s4404_s20 + $0x10] sm:$0xff] }
 0x6b6   : > { %v2562_v46 = vmax.f32 %v2546_v35, 0.0 }
 0x6b9   : > { %v2455_v28 = vpop.f32.mrf.mxu0 }
 0x6ba   : > { %v2456_v1 = vadd.f32 %v2455_v28, %v2083_v39  ;;  %v2449_v39 = vadd.f32 %v2448_v57, %v2076_v54  ;;  %v2480_v28 = vadd.f32 %v2479_v26, %v2127_v22 }
 0x6bb   : > { %v2484_v16 = vpop.f32.mrf.mxu1 }
 0x6bc   : > { %v2485_v41 = vadd.f32 %v2484_v16, %v2132_v36  ;;  %v2550_v34 = vadd.f32 %v4165_v13, %v2456_v1  ;;  %v2544_v54 = vadd.f32 %v4167_v29, %v2449_v39  ;;  %v2547_v57 = vadd.f32 %v4199_v51, %v2480_v28  ;;  %v3414_v1 = vld [vmem:[%s4404_s20 + $0x18] sm:$0xff] }
 0x6be   : > { %v2551_v33 = vadd.f32 %v4165_v13, %v2485_v41  ;;  %v2564_v13 = vmax.f32 %v2548_v27, 0.0  ;;  %v2545_v41 = vadd.f32 %v4167_v29, %v2478_v31 }
 0x6c1   : > { %v2458_v42 = vpop.f32.mrf.mxu0 }
 0x6c2   : > { %v2459_v14 = vadd.f32 %v2458_v42, %v2086_v37 }
 0x6c3   : > { %v2487_v43 = vpop.f32.mrf.mxu1 }
 0x6c4   : > { %v2488_v12 = vadd.f32 %v2487_v43, %v2135_v40  ;;  %v2552_v38 = vadd.f32 %v4154_v45, %v2459_v14  ;;  %v2549_v40 = vadd.f32 %v4183_v19, %v2483_v32  ;;  %v2557_v43 = vmax.f32 %v2541_v61, 0.0 }
 0x6c6   : > { %v2553_v56 = vadd.f32 %v4154_v45, %v2488_v12  ;;  %v2568_v36 = vmax.f32 %v2552_v38, 0.0  ;;  %v2566_v45 = vmax.f32 %v2550_v34, 0.0  ;;  %v2567_v38 = vmax.f32 %v2551_v33, 0.0 }
 0x6c7   : > { %v2565_v17 = vmax.f32 %v2549_v40, 0.0  ;;  %v2560_v34 = vmax.f32 %v2544_v54, 0.0 }
 0x6c8   : > { %v2569_v42 = vmax.f32 %v2553_v56, 0.0  ;;  %v2584_v19 = vpack.c.bf16 %v2566_v45, %v2564_v13  ;;  %v2540_v56 = vadd.f32 %v4177_v47, %v4264_v24  ;;  %v3412_v47 = vld [vmem:[%s4404_s20 + $0x8] sm:$0xff] }
 0x6c9   : > { %v2460_v50 = vpop.f32.mrf.mxu0  ;;  %v2585_v51 = vpack.c.bf16 %v2567_v38, %v2565_v17  ;;  %v2582_v29 = vpack.c.bf16 %v2562_v46, %v2560_v34 }
 0x6ca   : > { %v2461_v8 = vadd.f32 %v2460_v50, %v2088_v10  ;;  %v2556_v22 = vmax.f32 %v2540_v56, 0.0 }
 0x6cb   : > { %v2489_v23 = vpop.f32.mrf.mxu1 }
 0x6cc   : > { %v2554_v21 = vadd.f32 %v4157_v18, %v2461_v8  ;;  %v2490_v37 = vadd.f32 %v2489_v23, %v2137_v30  ;;  %v2475_v23 = vadd.f32 %v2474_v5, %v2122_v15  ;;  %v2563_v15 = vmax.f32 %v2547_v57, 0.0 }
 0x6cd   : > { %v2561_v5 = vmax.f32 %v2545_v41, 0.0 }
 0x6ce   : > { %v2570_v16 = vmax.f32 %v2554_v21, 0.0  ;;  %v2555_v0 = vadd.f32 %v4157_v18, %v2490_v37  ;;  %v2542_v18 = vadd.f32 %v4181_v48, %v2446_v20  ;;  %v2543_v32 = vadd.f32 %v4181_v48, %v2475_v23  ;;  %v3411_v48 = vld [vmem:[%s4404_s20] sm:$0xff] }
 0x6cf   : > { %v2583_v26 = vpack.c.bf16 %v2563_v15, %v2561_v5 }
 0x6d0   : > { %v2586_v8 = vpack.c.bf16 %v2570_v16, %v2568_v36  ;;  %v2571_v30 = vmax.f32 %v2555_v0, 0.0  ;;  %v2558_v7 = vmax.f32 %v2542_v18, 0.0  ;;  %v2559_v25 = vmax.f32 %v2543_v32, 0.0 }
 0x6d2   : > { %v2587_v21 = vpack.c.bf16 %v2571_v30, %v2569_v42  ;;  %2672 = vmatpush.bf16.msra.mxu2 %v2586_v8  ;;  %v2580_v24 = vpack.c.bf16 %v2558_v7, %v2556_v22  ;;  %v2581_v14 = vpack.c.bf16 %v2559_v25, %v2557_v43 }
 0x6d4   : > { %2701 = vmatpush.bf16.msra.mxu3 %v2587_v21 }
 0x6d6   : > { %2673 = vmatpush.bf16.msra.mxu2 %v2584_v19 }
 0x6d8   : > { %2702 = vmatpush.bf16.msra.mxu3 %v2585_v51 }
 0x6da   : > { %2674 = vmatpush.bf16.msra.mxu2 %v2582_v29 }
 0x6dc   : > { %2703 = vmatpush.bf16.msra.mxu3 %v2583_v26 }
 0x6de   : > { %2675 = vmatpush.bf16.msra.mxu2 %v2580_v24 }
 0x6e0   : > { %2704 = vmatpush.bf16.msra.mxu3 %v2581_v14 }
 0x6e1   : > { %3333 = vmatmul.msk.bf16.vlgmr.msra.gmra.mxu2 %vm1247_vm1, %v3411_v48 }
 0x6e3   : > { %3337 = vmatmul.msk.bf16.vlgmr.msra.gmra.mxu3 %vm1247_vm1, %v3411_v48 }
 0x6f1   : > { %3334 = vmatmul.msk.bf16.gmra.mxu2 %vm1247_vm1, %v3412_v47 }
 0x6f3   : > { %3338 = vmatmul.msk.bf16.gmra.mxu3 %vm1247_vm1, %v3412_v47 }
 0x701   : > { %3335 = vmatmul.msk.bf16.gmra.mxu2 %vm1247_vm1, %v3413_v2 }
 0x703   : > { %3339 = vmatmul.msk.bf16.gmra.mxu3 %vm1247_vm1, %v3413_v2 }
 0x711   : > { %3336 = vmatmul.msk.bf16.gmra.mxu2 %vm1247_vm1, %v3414_v1 }
 0x713   : > { %3340 = vmatmul.msk.bf16.gmra.mxu3 %vm1247_vm1, %v3414_v1 }
 0x764   : > { %v2677_v12 = vpop.f32.mrf.mxu2 }
 0x766   : > { %v2706_v44 = vpop.f32.mrf.mxu3 }
 0x76c   : > { %v2679_v10 = vpop.f32.mrf.mxu2 }
 0x76e   : > { %v2708_v50 = vpop.f32.mrf.mxu3 }
 0x76f   : > { %v2709_v5 = vadd.f32 %v2708_v50, %v4211_v9 }
 0x774   : > { %v2682_v37 = vpop.f32.mrf.mxu2 }
 0x776   : > { %v2711_v39 = vpop.f32.mrf.mxu3 }
 0x77c   : > { %v2684_v28 = vpop.f32.mrf.mxu2 }
 0x77d   : > { %v2685_v21 = vadd.f32 %v2684_v28, %v4203_v53 }
 0x77e   : > { %v2713_v27 = vpop.f32.mrf.mxu3 }
 0x77f   : > { %v2714_v56 = vadd.f32 %v2713_v27, %v4203_v53  ;;  %v2732_v51 = vmax.f32 %v2685_v21, 0.0  ;;  %v2707_v53 = vadd.f32 %v2706_v44, %v4227_v63  ;;  %v3418_v44 = vld [vmem:[%s4406_s22 + $0x18] sm:$0xff] }
 0x781   : > { %v2733_v22 = vmax.f32 %v2714_v56, 0.0  ;;  %v2727_v47 = vmax.f32 %v2707_v53, 0.0 }
 0x784   : > { %v2687_v33 = vpop.f32.mrf.mxu2 }
 0x785   : > { %v2688_v30 = vadd.f32 %v2687_v33, %v4190_v49 }
 0x786   : > { %v2716_v36 = vpop.f32.mrf.mxu3 }
 0x787   : > { %v2717_v18 = vadd.f32 %v2716_v36, %v4190_v49  ;;  %v2734_v32 = vmax.f32 %v2688_v30, 0.0  ;;  %v2678_v49 = vadd.f32 %v2677_v12, %v4227_v63  ;;  %v3416_v63 = vld [vmem:[%s4406_s22 + $0x8] sm:$0xff]  ;;  %v3417_v12 = vld [vmem:[%s4406_s22 + $0x10] sm:$0xff] }
 0x789   : > { %v2735_v61 = vmax.f32 %v2717_v18, 0.0  ;;  %v2726_v48 = vmax.f32 %v2678_v49, 0.0 }
 0x78c   : > { %v2689_v16 = vpop.f32.mrf.mxu2 }
 0x78d   : > { %v2690_v45 = vadd.f32 %v2689_v16, %v4216_v58 }
 0x78e   : > { %v2718_v0 = vpop.f32.mrf.mxu3 }
 0x78f   : > { %v2719_v54 = vadd.f32 %v2718_v0, %v4216_v58  ;;  %v2736_v41 = vmax.f32 %v2690_v45, 0.0  ;;  %v2680_v58 = vadd.f32 %v2679_v10, %v4211_v9  ;;  %v3415_v9 = vld [vmem:[%s4406_s22] sm:$0xff] }
 0x791   : > { %v2737_v34 = vmax.f32 %v2719_v54, 0.0  ;;  %v2754_v7 = vpack.c.bf16 %v2736_v41, %v2734_v32  ;;  %v2728_v26 = vmax.f32 %v2680_v58, 0.0 }
 0x793   : > { %v2755_v25 = vpack.c.bf16 %v2737_v34, %v2735_v61  ;;  %v2750_v2 = vpack.c.bf16 %v2728_v26, %v2726_v48 }
 0x794   : > { %v2692_v20 = vpop.f32.mrf.mxu2 }
 0x795   : > { %v2693_v35 = vadd.f32 %v2692_v20, %v4208_v6 }
 0x796   : > { %v2721_v31 = vpop.f32.mrf.mxu3 }
 0x797   : > { %v2722_v42 = vadd.f32 %v2721_v31, %v4208_v6  ;;  %v2738_v57 = vmax.f32 %v2693_v35, 0.0  ;;  %v2683_v6 = vadd.f32 %v2682_v37, %v4201_v52 }
 0x799   : > { %v2739_v46 = vmax.f32 %v2722_v42, 0.0  ;;  %v2730_v29 = vmax.f32 %v2683_v6, 0.0 }
 0x79b   : > { %v2752_v24 = vpack.c.bf16 %v2732_v51, %v2730_v29 }
 0x79c   : > { %v2694_v40 = vpop.f32.mrf.mxu2 }
 0x79d   : > { %v2695_v8 = vadd.f32 %v2694_v40, %v4188_v11 }
 0x79e   : > { %v2723_v23 = vpop.f32.mrf.mxu3 }
 0x79f   : > { %v2740_v13 = vmax.f32 %v2695_v8, 0.0  ;;  %v2724_v38 = vadd.f32 %v2723_v23, %v4188_v11  ;;  %v2712_v11 = vadd.f32 %v2711_v39, %v4201_v52  ;;  %v2729_v52 = vmax.f32 %v2709_v5, 0.0 }
 0x7a1   : > { %v2756_v17 = vpack.c.bf16 %v2740_v13, %v2738_v57  ;;  %v2741_v19 = vmax.f32 %v2724_v38, 0.0  ;;  %v2731_v43 = vmax.f32 %v2712_v11, 0.0  ;;  %v2751_v1 = vpack.c.bf16 %v2729_v52, %v2727_v47 }
 0x7a3   : > { %v2757_v15 = vpack.c.bf16 %v2741_v19, %v2739_v46  ;;  %2842 = vmatpush.bf16.msrb.mxu0 %v2756_v17  ;;  %v2753_v14 = vpack.c.bf16 %v2733_v22, %v2731_v43 }
 0x7a5   : > { %2871 = vmatpush.bf16.msrb.mxu1 %v2757_v15 }
 0x7a7   : > { %2843 = vmatpush.bf16.msrb.mxu0 %v2754_v7 }
 0x7a9   : > { %2872 = vmatpush.bf16.msrb.mxu1 %v2755_v25 }
 0x7ab   : > { %2844 = vmatpush.bf16.msrb.mxu0 %v2752_v24 }
 0x7ad   : > { %2873 = vmatpush.bf16.msrb.mxu1 %v2753_v14 }
 0x7af   : > { %2845 = vmatpush.bf16.msrb.mxu0 %v2750_v2  ;;  %v4465_v2 = vld [vmem:[#allocation15_spill] sm:$0xff] }
 0x7b1   : > { %2874 = vmatpush.bf16.msrb.mxu1 %v2751_v1  ;;  %v4467_v1 = vld [vmem:[#allocation13_spill] sm:$0xff] }
 0x7b2   : > { %3357 = vmatmul.msk.bf16.vlgmr.msrb.gmra.mxu0 %vm1247_vm1, %v3415_v9 }
 0x7b4   : > { %3361 = vmatmul.msk.bf16.vlgmr.msrb.gmra.mxu1 %vm1247_vm1, %v3415_v9  ;;  %v4466_v9 = vld [vmem:[#allocation16_spill] sm:$0xff] }
 0x7c2   : > { %3358 = vmatmul.msk.bf16.gmra.mxu0 %vm1247_vm1, %v3416_v63 }
 0x7c4   : > { %3362 = vmatmul.msk.bf16.gmra.mxu1 %vm1247_vm1, %v3416_v63  ;;  %v4468_v63 = vld [vmem:[#allocation14_spill] sm:$0xff] }
 0x7d2   : > { %3359 = vmatmul.msk.bf16.gmra.mxu0 %vm1247_vm1, %v3417_v12 }
 0x7d4   : > { %3363 = vmatmul.msk.bf16.gmra.mxu1 %vm1247_vm1, %v3417_v12  ;;  %v4469_v12 = vld [vmem:[#allocation11_spill] sm:$0xff] }
 0x7e2   : > { %3360 = vmatmul.msk.bf16.gmra.mxu0 %vm1247_vm1, %v3418_v44 }
 0x7e4   : > { %3364 = vmatmul.msk.bf16.gmra.mxu1 %vm1247_vm1, %v3418_v44  ;;  %v4470_v44 = vld [vmem:[#allocation12_spill] sm:$0xff] }
 0x82f   : > { %v2847_v10 = vpop.f32.mrf.mxu0 }
 0x831   : > { %v2876_v50 = vpop.f32.mrf.mxu1 }
 0x837   : > { %v2849_v37 = vpop.f32.mrf.mxu0 }
 0x839   : > { %v2878_v39 = vpop.f32.mrf.mxu1 }
 0x83f   : > { %v2852_v28 = vpop.f32.mrf.mxu0 }
 0x841   : > { %v2881_v27 = vpop.f32.mrf.mxu1 }
 0x847   : > { %v2854_v33 = vpop.f32.mrf.mxu0 }
 0x848   : > { %v2855_v41 = vadd.f32 %v2854_v33, %v4229_v4 }
 0x849   : > { %v2883_v36 = vpop.f32.mrf.mxu1 }
 0x84a   : > { %v2884_v32 = vadd.f32 %v2883_v36, %v4229_v4  ;;  %v2902_v51 = vmax.f32 %v2855_v41, 0.0 }
 0x84c   : > { %v2903_v22 = vmax.f32 %v2884_v32, 0.0 }
 0x84f   : > { %v2857_v16 = vpop.f32.mrf.mxu0 }
 0x850   : > { %v2858_v54 = vadd.f32 %v2857_v16, %v4218_v60 }
 0x851   : > { %v2886_v0 = vpop.f32.mrf.mxu1 }
 0x852   : > { %v2887_v46 = vadd.f32 %v2886_v0, %v4218_v60  ;;  %v2904_v34 = vmax.f32 %v2858_v54, 0.0  ;;  %v4464_v60 = vld [vmem:[#allocation7_spill] sm:$0xff] }
 0x853   : > { %v2848_v49 = vadd.f32 %v2847_v10, %v4464_v60  ;;  %v2877_v4 = vadd.f32 %v2876_v50, %v4464_v60  ;;  %v4471_v10 = vld [vmem:[#allocation9_spill] sm:$0xff]  ;;  %v2912_v50 = vld [vmem:[%s4408_s24] sm:$0x3] }
 0x854   : > { %v2905_v61 = vmax.f32 %v2887_v46, 0.0 }
 0x855   : > { %v2896_v24 = vmax.f32 %v2848_v49, 0.0  ;;  %v2897_v52 = vmax.f32 %v2877_v4, 0.0 }
 0x857   : > { %v2859_v20 = vpop.f32.mrf.mxu0 }
 0x858   : > { %v2860_v8 = vadd.f32 %v2859_v20, %v4223_v62 }
 0x859   : > { %v2888_v31 = vpop.f32.mrf.mxu1 }
 0x85a   : > { %v2889_v13 = vadd.f32 %v2888_v31, %v4223_v62  ;;  %v2906_v17 = vmax.f32 %v2860_v8, 0.0  ;;  %v4463_v62 = vld [vmem:[#allocation8_spill] sm:$0xff] }
 0x85b   : > { %v2850_v11 = vadd.f32 %v2849_v37, %v4463_v62  ;;  %v2879_v5 = vadd.f32 %v2878_v39, %v4463_v62  ;;  %v4472_v37 = vld [vmem:[#allocation10_spill] sm:$0xff] }
 0x85c   : > { %v2907_v15 = vmax.f32 %v2889_v13, 0.0  ;;  %v2925_v7 = vpack.c.bf16 %v2906_v17, %v2904_v34 }
 0x85d   : > { %v2898_v53 = vmax.f32 %v2850_v11, 0.0 }
 0x85e   : > { %v2926_v25 = vpack.c.bf16 %v2907_v15, %v2905_v61 }
 0x85f   : > { %v2862_v35 = vpop.f32.mrf.mxu0  ;;  %v2921_v14 = vpack.c.bf16 %v2898_v53, %v2896_v24 }
 0x860   : > { %v2863_v45 = vadd.f32 %v2862_v35, %v4214_v55 }
 0x861   : > { %v2891_v40 = vpop.f32.mrf.mxu1 }
 0x862   : > { %v2892_v30 = vadd.f32 %v2891_v40, %v4214_v55  ;;  %v2908_v38 = vmax.f32 %v2863_v45, 0.0  ;;  %v2853_v55 = vadd.f32 %v2852_v28, %v4242_v3  ;;  %v2933_v28 = vpop.permute.xlu0 %2932 }
 0x864   : > { %v2909_v19 = vmax.f32 %v2892_v30, 0.0  ;;  %v2900_v29 = vmax.f32 %v2853_v55, 0.0 }
 0x866   : > { %v2923_v43 = vpack.c.bf16 %v2902_v51, %v2900_v29 }
 0x867   : > { %v2864_v42 = vpop.f32.mrf.mxu0 }
 0x868   : > { %v2865_v23 = vadd.f32 %v2864_v42, %v4236_v59 }
 0x869   : > { %v2893_v57 = vpop.f32.mrf.mxu1 }
 0x86a   : > { %v2910_v21 = vmax.f32 %v2865_v23, 0.0  ;;  %v2894_v18 = vadd.f32 %v2893_v57, %v4236_v59  ;;  %v2882_v59 = vadd.f32 %v2881_v27, %v4242_v3  ;;  %v2899_v3 = vmax.f32 %v2879_v5, 0.0 }
 0x86c   : > { %v2927_v6 = vpack.c.bf16 %v2910_v21, %v2908_v38  ;;  %v2911_v56 = vmax.f32 %v2894_v18, 0.0  ;;  %v2901_v26 = vmax.f32 %v2882_v59, 0.0  ;;  %v2922_v47 = vpack.c.bf16 %v2899_v3, %v2897_v52 }
 0x86e   : > { %v2928_v58 = vpack.c.bf16 %v2911_v56, %v2909_v19  ;;  %2935 = vmatpush.bf16.msrb.mxu2 %v2927_v6  ;;  %v2924_v48 = vpack.c.bf16 %v2903_v22, %v2901_v26 }
 0x870   : > { %2948 = vmatpush.bf16.msrb.mxu3 %v2928_v58 }
 0x872   : > { %2936 = vmatpush.bf16.msrb.mxu2 %v2925_v7 }
 0x874   : > { %2949 = vmatpush.bf16.msrb.mxu3 %v2926_v25 }
 0x876   : > { %2937 = vmatpush.bf16.msrb.mxu2 %v2923_v43 }
 0x878   : > { %2950 = vmatpush.bf16.msrb.mxu3 %v2924_v48 }
 0x87a   : > { %2938 = vmatpush.bf16.msrb.mxu2 %v2921_v14 }
 0x87c   : > { %2951 = vmatpush.bf16.msrb.mxu3 %v2922_v47 }
 0x87e   : > { %2939 = vmatpush.bf16.msrb.mxu2 %v4465_v2 }
 0x880   : > { %2952 = vmatpush.bf16.msrb.mxu3 %v4466_v9 }
 0x882   : > { %2940 = vmatpush.bf16.msrb.mxu2 %v4467_v1 }
 0x884   : > { %2953 = vmatpush.bf16.msrb.mxu3 %v4468_v63 }
 0x886   : > { %2941 = vmatpush.bf16.msrb.mxu2 %v4469_v12 }
 0x888   : > { %2954 = vmatpush.bf16.msrb.mxu3 %v4470_v44 }
 0x88a   : > { %2942 = vmatpush.bf16.msrb.mxu2 %v4471_v10 }
 0x88c   : > { %2955 = vmatpush.bf16.msrb.mxu3 %v4472_v37 }
 0x88d   : > { %2943 = vmatmul.bf16.vlgmr.msrb.gmra.mxu2 %v2912_v50 }
 0x88f   : > { %2956 = vmatmul.bf16.vlgmr.msrb.gmra.mxu3 %v2912_v50 }
 0x910   : > { %v2944_v39 = vpop.f32.mrf.mxu2 }
 0x911   : > { %v2945_v33 = vadd.f32 %v2944_v39, %v2933_v28 }
 0x912   : > { %v2957_v27 = vpop.f32.mrf.mxu3 }
 0x913   : > { %v2958_v36 = vadd.f32 %v2957_v27, %v2933_v28 }
 0x915   : > { %3447 = vtanh.f32 %v2958_v36 }
 0x916   : > { %3449 = vtanh.f32 %v2945_v33 }
 0x918   : > { %v2946_v16 = vpop.f32.mrf.mxu2 }
 0x91a   : > { %v2959_v0 = vpop.f32.mrf.mxu3 }
 0x91b   : > { %v3448_v20 = vpop.eup %3447 }
 0x91c   : > { %v2965_v31 = vrot.slane %v3448_v20, 4  ;;  %v3450_v35 = vpop.eup %3449 }
 0x91e   : > { %v2967_v40 = vsel %vm2966_vm2, %v3450_v35, %v2965_v31 }
 0x91f   : > { %2969 = vst [vmem:[%s881_s4] sm:$0xff] %v2967_v40 }
 0x920 PF: > { %s4474_s7 = sld [smem:[#allocation5_spill]] }
 0x921   : > { %s4475_s27 = sld [smem:[#allocation4_spill]] }
 0x922   : > { %s4476_s3 = sld [smem:[#allocation6_spill]] }
 0x926   : > { %p33_p9 = scmp.ge.s32.totalorder %s4474_s7, 4  }
 0x928   :  { %35 = sbr.rel (!%p33_p9) target bundleno = 14 (0xe), region = 213 }

</bundles_post_ra>
